<compile_context>
chip_gen: v6e
topology: v6e:2x2x1
jax: 0.10.0
libtpu: 0.0.40
codegen_flags: <defaults>
</compile_context>

<pallas_src>
import functools
import math

import jax
import jax.numpy as jnp
from jax.experimental import pallas as pl
from jax.experimental.pallas import tpu as pltpu

# Finite "-inf": exp underflows to exactly 0, no NaNs.  Semantic divergence from
# PyTorch: a fully-masked row yields uniform 1/S attention instead of NaN.
_NEG_INF = -1e30


def _mha_kernel(x_ref, wqkv_ref, bqkv_ref, wo3_ref, *rest,
                num_heads, d_h, has_causal, has_padding):
    idx = 0
    cbias_ref = pbias_ref = None
    if has_causal:
        cbias_ref = rest[idx]; idx += 1
    if has_padding:
        pbias_ref = rest[idx]; idx += 1
    o_ref = rest[idx]

    tb, s, e = x_ref.shape
    rows = tb * s
    H = num_heads

    # ---- fused QKV projection: one (tb*S, E) @ (E, 3E) bf16 matmul, f32 accumulate.
    x2d = x_ref[...].reshape(rows, e)                       # already bf16 (wrapper)
    qkv = jnp.dot(x2d, wqkv_ref[...],
                  preferred_element_type=jnp.float32) + bqkv_ref[...]
    # 128-aligned lane slices; 1/sqrt(d_h) is already folded into W_Q / b_Q.
    q3 = qkv[:, :e].reshape(tb, s, e)
    k3 = qkv[:, e:2 * e].reshape(tb, s, e)
    v3 = qkv[:, 2 * e:].reshape(tb, s, e)

    # ---- one-time head split into a fused (H*tb) batch dim, then batched einsums.
    # TODO(synk): replace the per-head lane slices with a single relayout
    # (pltpu.einshape) once (m, E) -> (H, m, d_h) reshapes lower robustly.
    def split_heads(t3):
        heads = [t3[:, :, h * d_h:(h + 1) * d_h] for h in range(H)]
        return jnp.stack(heads, axis=0).astype(jnp.bfloat16).reshape(H * tb, s, d_h)

    qh = split_heads(q3)
    kh = split_heads(k3)
    vh = split_heads(v3)

    # Batched scores for all heads at once; contraction on the last dim of both
    # operands (no k transpose).
    scores = jnp.einsum('nqd,nkd->nqk', qh, kh,
                        preferred_element_type=jnp.float32)        # (H*tb, s, s) f32

    # Additive mask biases (0 / -1e30), added directly (never materialized as a
    # (tb, S, S) buffer).  If a key is masked by both masks the bias sums to -2e30,
    # still finite and safe because the row max is subtracted before exp.
    if has_causal:
        scores = scores + cbias_ref[...][None]                     # (s, s) broadcast
    if has_padding:
        scores = scores + jnp.tile(pbias_ref[...], (H, 1, 1))      # (H*tb, 1, s)

    # Numerically stable softmax: f32 statistics, EUP reciprocal for the denominator.
    m = jnp.max(scores, axis=-1, keepdims=True)
    p = jnp.exp(scores - m)
    denom = jnp.sum(p, axis=-1, keepdims=True)
    attn = (p * pl.reciprocal(denom, approx=True)).astype(jnp.bfloat16)

    ctx = jnp.einsum('nqk,nkd->nqd', attn, vh,
                     preferred_element_type=jnp.float32)           # (H*tb, s, d_h)
    ctx = ctx.astype(jnp.bfloat16).reshape(H, rows, d_h)

    # ---- output projection folded per head into a single f32 accumulator.
    # No lane-dim concatenate and no H live context buffers; the adds are VPU
    # filler under the matmuls.
    # TODO(synk): fold into one K=E contraction (einsum 'hmd,hde->me') once Mosaic
    # lowers multi-contracting-dim dot_generals.
    out = jnp.zeros((rows, e), jnp.float32)
    for h in range(H):
        out = out + jnp.dot(ctx[h], wo3_ref[h],
                            preferred_element_type=jnp.float32)
    o_ref[...] = out.reshape(tb, s, e).astype(o_ref.dtype)


def _vmem_capacity_bytes():
    try:
        return int(pltpu.get_tpu_info().vmem_capacity_bytes)
    except Exception:
        return 64 * 1024 * 1024      # conservative fallback: v7x per-core VMEM


def _step_vmem_bytes(tb, S, E, H, has_causal, has_padding):
    """Rough per-grid-step VMEM footprint: pipelined I/O + live intermediates."""
    bf2, f4 = 2, 4
    rows = tb * S
    io = 2 * rows * E * bf2 + 2 * rows * E * f4               # x (bf16) + out (f32), double-buffered
    w = 2 * (E * 3 * E * bf2 + E * E * bf2 + 3 * E * f4)      # W_QKV, W_O, b_QKV, double-buffered
    masks = (2 * S * S * f4 if has_causal else 0) + (2 * tb * S * f4 if has_padding else 0)
    inter = (rows * 3 * E * f4                 # qkv f32
             + 3 * rows * E * bf2              # head-split q/k/v bf16
             + H * tb * S * S * (f4 + f4 + bf2)   # scores, p, attn
             + rows * E * (bf2 + f4))          # ctx bf16 + W_O accumulator f32
    return io + w + masks + inter


def _pick_batch_tile(B, S, E, H, has_causal, has_padding, vmem_cap):
    # Keep >= 2 grid steps when possible so the 'parallel' axis can be sharded over
    # v7x's two TensorCores (the extra ~0.35us step on 1-TC chips is negligible).
    limit = max(1, B // 2) if B >= 2 else 1
    budget = int(0.45 * vmem_cap)              # headroom for compiler scratch / spills
    tb = 1
    for cand in range(1, limit + 1):
        if B % cand == 0 and _step_vmem_bytes(cand, S, E, H, has_causal, has_padding) <= budget:
            tb = cand
    # TODO(synk): if even tb=1 blows the budget (long S), switch to the flash-style
    # online-softmax KV tiling instead of materializing the full (S, S) scores.
    return tb


def multi_head_attention(x, w_q, b_q, w_k, b_k, w_v, b_v, w_o,
                         causal_mask=None, padding_mask=None, *, num_heads):
    """Pallas implementation of MultiHeadAttention.forward.

    x: (B, S, E) float32
    w_q/w_k/w_v: (E, E)  -- per-head (E, d_h) weights concatenated along dim -1
    b_q/b_k/b_v: (E,)
    w_o: (E, E)
    causal_mask: optional (S, S) {0,1} (0 => masked)
    padding_mask: optional (B, S) bool/int (nonzero => masked key)
    Returns (B, S, E) float32.
    """
    B, S, E = x.shape
    assert E % num_heads == 0, "emb_dim must be divisible by num_heads"
    d_h = E // num_heads
    scale = 1.0 / math.sqrt(d_h)

    has_causal = causal_mask is not None
    has_padding = padding_mask is not None

    # One-time wrapper-side packing: fused QKV weight/bias (score scale folded into
    # the Q projection), bf16 weights and activations, W_O reshaped per head.
    wqkv = jnp.concatenate([w_q * scale, w_k, w_v], axis=1).astype(jnp.bfloat16)
    bqkv = jnp.concatenate([b_q * scale, b_k, b_v]).reshape(1, 3 * E).astype(jnp.float32)
    wo3 = w_o.reshape(num_heads, d_h, E).astype(jnp.bfloat16)
    x_bf = x.astype(jnp.bfloat16)

    vmem_cap = _vmem_capacity_bytes()
    tb = _pick_batch_tile(B, S, E, num_heads, has_causal, has_padding, vmem_cap)
    grid = (B // tb,)

    kernel = functools.partial(_mha_kernel, num_heads=num_heads, d_h=d_h,
                               has_causal=has_causal, has_padding=has_padding)

    in_specs = [
        pl.BlockSpec((tb, S, E), lambda b: (b, 0, 0)),             # x (bf16)
        # TODO(synk): pipeline_mode=pl.Buffered(1) on these constant-index weight
        # blocks would halve their resident VMEM on v7x.
        pl.BlockSpec((E, 3 * E), lambda b: (0, 0)),                # fused W_QKV
        pl.BlockSpec((1, 3 * E), lambda b: (0, 0)),                # fused b_QKV
        pl.BlockSpec((num_heads, d_h, E), lambda b: (0, 0, 0)),    # W_O as (H, d_h, E)
    ]
    args = [x_bf, wqkv, bqkv, wo3]

    if has_causal:
        cbias = jnp.where(causal_mask == 0, _NEG_INF, 0.0).astype(jnp.float32)
        in_specs.append(pl.BlockSpec((S, S), lambda b: (0, 0)))
        args.append(cbias)
    if has_padding:
        pbias = jnp.where(padding_mask, _NEG_INF, 0.0).astype(jnp.float32).reshape(B, 1, S)
        in_specs.append(pl.BlockSpec((tb, 1, S), lambda b: (b, 0, 0)))
        args.append(pbias)

    return pl.pallas_call(
        kernel,
        out_shape=jax.ShapeDtypeStruct((B, S, E), jnp.float32),
        grid_spec=pltpu.PrefetchScalarGridSpec(
            num_scalar_prefetch=0,
            grid=grid,
            in_specs=in_specs,
            out_specs=pl.BlockSpec((tb, S, E), lambda b: (b, 0, 0)),
        ),
        compiler_params=pltpu.CompilerParams(
            dimension_semantics=("parallel",),
            vmem_limit_bytes=max(32 * 1024 * 1024, int(0.75 * vmem_cap)),
        ),
    )(*args)


# ----------------------------- references / test -----------------------------

def _reference_f32(x, w_q, b_q, w_k, b_k, w_v, b_v, w_o,
                   causal_mask, padding_mask, num_heads):
    """Exact PyTorch semantics (per-head attention, concat, @ W_O) in f32."""
    B, S, E = x.shape
    d_h = E // num_heads
    q = (x @ w_q + b_q).reshape(B, S, num_heads, d_h)
    k = (x @ w_k + b_k).reshape(B, S, num_heads, d_h)
    v = (x @ w_v + b_v).reshape(B, S, num_heads, d_h)
    scores = jnp.einsum('bqhd,bkhd->bhqk', q, k) / math.sqrt(d_h)
    if causal_mask is not None:
        scores = jnp.where(causal_mask[None, None, :, :] == 0, -jnp.inf, scores)
    if padding_mask is not None:
        scores = jnp.where(padding_mask[:, None, None, :], -jnp.inf, scores)
    attn = jax.nn.softmax(scores, axis=-1)
    ctx = jnp.einsum('bhqk,bkhd->bqhd', attn, v).reshape(B, S, E)
    return ctx @ w_o


def _reference_bf16(x, w_q, b_q, w_k, b_k, w_v, b_v, w_o,
                    causal_mask, padding_mask, num_heads):
    """Same math with the kernel's bf16-operand / f32-accumulate precision."""
    B, S, E = x.shape
    H = num_heads
    d_h = E // H
    bf, f32 = jnp.bfloat16, jnp.float32
    scale = 1.0 / math.sqrt(d_h)
    xb = x.astype(bf)
    q = jnp.einsum('bse,ed->bsd', xb, (w_q * scale).astype(bf),
                   preferred_element_type=f32) + b_q * scale
    k = jnp.einsum('bse,ed->bsd', xb, w_k.astype(bf),
                   preferred_element_type=f32) + b_k
    v = jnp.einsum('bse,ed->bsd', xb, w_v.astype(bf),
                   preferred_element_type=f32) + b_v
    q = q.reshape(B, S, H, d_h)
    k = k.reshape(B, S, H, d_h)
    v = v.reshape(B, S, H, d_h)
    scores = jnp.einsum('bqhd,bkhd->bhqk', q.astype(bf), k.astype(bf),
                        preferred_element_type=f32)
    if causal_mask is not None:
        scores = scores + jnp.where(causal_mask == 0, _NEG_INF, 0.0)[None, None]
    if padding_mask is not None:
        scores = scores + jnp.where(padding_mask, _NEG_INF, 0.0)[:, None, None, :]
    attn = jax.nn.softmax(scores, axis=-1)
    ctx = jnp.einsum('bhqk,bkhd->bqhd', attn.astype(bf), v.astype(bf),
                     preferred_element_type=f32)
    return jnp.einsum('bqhd,hde->bqe', ctx.astype(bf),
                      w_o.reshape(H, d_h, E).astype(bf),
                      preferred_element_type=f32)


def _xavier_uniform(key, fan_in, fan_out):
    bound = math.sqrt(6.0 / (fan_in + fan_out))
    return jax.random.uniform(key, (fan_in, fan_out), jnp.float32, -bound, bound)


if __name__ == "__main__":
    B, S, E, H = 4, 16, 128, 8      # emb_dim=128 keeps every stored block lane-dense
    d_h = E // H

    key = jax.random.PRNGKey(0)
    keys = jax.random.split(key, 2 + 3 * H)
    x = jax.random.normal(keys[0], (B, S, E), jnp.float32)

    # Mirror reset_parameters(): per-head xavier_uniform (E, d_h), zero biases,
    # heads concatenated along the last dim; xavier_uniform W_O.
    w_q = jnp.concatenate([_xavier_uniform(keys[1 + h], E, d_h) for h in range(H)], axis=1)
    w_k = jnp.concatenate([_xavier_uniform(keys[1 + H + h], E, d_h) for h in range(H)], axis=1)
    w_v = jnp.concatenate([_xavier_uniform(keys[1 + 2 * H + h], E, d_h) for h in range(H)], axis=1)
    w_o = _xavier_uniform(keys[1 + 3 * H], E, E)
    b_q = jnp.zeros((E,), jnp.float32)
    b_k = jnp.zeros((E,), jnp.float32)
    b_v = jnp.zeros((E,), jnp.float32)

    # Causal mask (lower-triangular ones) and a per-batch tail padding mask.
    causal_mask = jnp.tril(jnp.ones((S, S), jnp.int32))
    lengths = jnp.array([S, S - 3, S - 1, 5])
    padding_mask = jnp.arange(S)[None, :] >= lengths[:, None]   # (B, S) bool

    # Both masks.
    out = jax.block_until_ready(
        multi_head_attention(x, w_q, b_q, w_k, b_k, w_v, b_v, w_o,
                             causal_mask=causal_mask, padding_mask=padding_mask,
                             num_heads=H))
    assert out.shape == (B, S, E)
    ref_bf = _reference_bf16(x, w_q, b_q, w_k, b_k, w_v, b_v, w_o,
                             causal_mask, padding_mask, H)
    ref_32 = _reference_f32(x, w_q, b_q, w_k, b_k, w_v, b_v, w_o,
                            causal_mask, padding_mask, H)
    assert jnp.allclose(out, ref_bf, atol=2e-2, rtol=2e-2), "mismatch vs bf16-matched ref"
    assert jnp.allclose(out, ref_32, atol=1e-1, rtol=1e-1), "mismatch vs f32 ref"

    # Causal-only path (padding bias is statically removed: no dead DMAs/adds).
    out_c = jax.block_until_ready(
        multi_head_attention(x, w_q, b_q, w_k, b_k, w_v, b_v, w_o,
                             causal_mask=causal_mask, num_heads=H))
    ref_c = _reference_bf16(x, w_q, b_q, w_k, b_k, w_v, b_v, w_o,
                            causal_mask, None, H)
    assert jnp.allclose(out_c, ref_c, atol=2e-2, rtol=2e-2), "mismatch (causal only)"

    # No-mask fast path.
    out_nm = jax.block_until_ready(
        multi_head_attention(x, w_q, b_q, w_k, b_k, w_v, b_v, w_o, num_heads=H))
    ref_nm = _reference_bf16(x, w_q, b_q, w_k, b_k, w_v, b_v, w_o, None, None, H)
    assert jnp.allclose(out_nm, ref_nm, atol=2e-2, rtol=2e-2), "mismatch (no mask)"

    print("KERNEL_OK")
</pallas_src>

<mosaic_0001>
module attributes {stable_mosaic.version = 11 : i64} {
  func.func @_mha_kernel(%arg0: i32, %arg1: memref<2x16x128xbf16, #tpu.memory_space<vmem>>, %arg2: memref<128x384xbf16, #tpu.memory_space<vmem>>, %arg3: memref<1x384xf32, #tpu.memory_space<vmem>>, %arg4: memref<8x16x128xbf16, #tpu.memory_space<vmem>>, %arg5: memref<16x16xf32, #tpu.memory_space<vmem>>, %arg6: memref<2x1x16xf32, #tpu.memory_space<vmem>>, %arg7: memref<2x16x128xf32, #tpu.memory_space<vmem>>) attributes {dimension_semantics = [#tpu.dimension_semantics<parallel>], iteration_bounds = array<i64: 2>, scalar_prefetch = 0 : i64, scratch_operands = 0 : i64, tpu.core_type = #tpu.core_type<tc>, window_params = [{transform_indices = @transform_0, window_bounds = array<i64: 2, 16, 128>}, {pipeline_mode = #tpu.pipeline_mode<synchronous>, transform_indices = @transform_1, window_bounds = array<i64: 128, 384>}, {pipeline_mode = #tpu.pipeline_mode<synchronous>, transform_indices = @transform_2, window_bounds = array<i64: 1, 384>}, {pipeline_mode = #tpu.pipeline_mode<synchronous>, transform_indices = @transform_3, window_bounds = array<i64: 8, 16, 128>}, {pipeline_mode = #tpu.pipeline_mode<synchronous>, transform_indices = @transform_4, window_bounds = array<i64: 16, 16>}, {transform_indices = @transform_5, window_bounds = array<i64: 2, 1, 16>}, {transform_indices = @transform_6, window_bounds = array<i64: 2, 16, 128>}]} {
    %c0 = arith.constant 0 : index
    %c0_0 = arith.constant 0 : index
    %c0_1 = arith.constant 0 : index
    %0 = vector.load %arg1[%c0, %c0_0, %c0_1] : memref<2x16x128xbf16, #tpu.memory_space<vmem>>, vector<2x16x128xbf16>
    %1 = vector.shape_cast %0 : vector<2x16x128xbf16> to vector<32x128xbf16>
    %c0_2 = arith.constant 0 : index
    %c0_3 = arith.constant 0 : index
    %2 = vector.load %arg2[%c0_2, %c0_3] : memref<128x384xbf16, #tpu.memory_space<vmem>>, vector<128x384xbf16>
    %cst = arith.constant dense<0.000000e+00> : vector<32x384xf32>
    %3 = tpu.matmul %1, %2, %cst {dimension_numbers = #tpu.dot_dimension_numbers<[1], [0], [0], [1], [0, 0, 1, 1], [], []>} : vector<32x128xbf16>, vector<128x384xbf16>, vector<32x384xf32> -> vector<32x384xf32>
    %c0_4 = arith.constant 0 : index
    %c0_5 = arith.constant 0 : index
    %4 = vector.load %arg3[%c0_4, %c0_5] : memref<1x384xf32, #tpu.memory_space<vmem>>, vector<1x384xf32>
    %5 = vector.broadcast %4 : vector<1x384xf32> to vector<32x384xf32>
    %6 = arith.addf %3, %5 : vector<32x384xf32>
    %7 = vector.extract_strided_slice %6 {offsets = [0, 0], sizes = [32, 128], strides = [1, 1]} : vector<32x384xf32> to vector<32x128xf32>
    %8 = vector.shape_cast %7 : vector<32x128xf32> to vector<2x16x128xf32>
    %9 = vector.extract_strided_slice %6 {offsets = [0, 128], sizes = [32, 128], strides = [1, 1]} : vector<32x384xf32> to vector<32x128xf32>
    %10 = vector.shape_cast %9 : vector<32x128xf32> to vector<2x16x128xf32>
    %11 = vector.extract_strided_slice %6 {offsets = [0, 256], sizes = [32, 128], strides = [1, 1]} : vector<32x384xf32> to vector<32x128xf32>
    %12 = vector.shape_cast %11 : vector<32x128xf32> to vector<2x16x128xf32>
    %13 = vector.extract_strided_slice %8 {offsets = [0, 0, 0], sizes = [2, 16, 16], strides = [1, 1, 1]} : vector<2x16x128xf32> to vector<2x16x16xf32>
    %14 = vector.extract_strided_slice %8 {offsets = [0, 0, 16], sizes = [2, 16, 16], strides = [1, 1, 1]} : vector<2x16x128xf32> to vector<2x16x16xf32>
    %15 = vector.extract_strided_slice %8 {offsets = [0, 0, 32], sizes = [2, 16, 16], strides = [1, 1, 1]} : vector<2x16x128xf32> to vector<2x16x16xf32>
    %16 = vector.extract_strided_slice %8 {offsets = [0, 0, 48], sizes = [2, 16, 16], strides = [1, 1, 1]} : vector<2x16x128xf32> to vector<2x16x16xf32>
    %17 = vector.extract_strided_slice %8 {offsets = [0, 0, 64], sizes = [2, 16, 16], strides = [1, 1, 1]} : vector<2x16x128xf32> to vector<2x16x16xf32>
    %18 = vector.extract_strided_slice %8 {offsets = [0, 0, 80], sizes = [2, 16, 16], strides = [1, 1, 1]} : vector<2x16x128xf32> to vector<2x16x16xf32>
    %19 = vector.extract_strided_slice %8 {offsets = [0, 0, 96], sizes = [2, 16, 16], strides = [1, 1, 1]} : vector<2x16x128xf32> to vector<2x16x16xf32>
    %20 = vector.extract_strided_slice %8 {offsets = [0, 0, 112], sizes = [2, 16, 16], strides = [1, 1, 1]} : vector<2x16x128xf32> to vector<2x16x16xf32>
    %21 = vector.shape_cast %13 : vector<2x16x16xf32> to vector<1x2x16x16xf32>
    %22 = vector.shape_cast %14 : vector<2x16x16xf32> to vector<1x2x16x16xf32>
    %23 = vector.shape_cast %15 : vector<2x16x16xf32> to vector<1x2x16x16xf32>
    %24 = vector.shape_cast %16 : vector<2x16x16xf32> to vector<1x2x16x16xf32>
    %25 = vector.shape_cast %17 : vector<2x16x16xf32> to vector<1x2x16x16xf32>
    %26 = vector.shape_cast %18 : vector<2x16x16xf32> to vector<1x2x16x16xf32>
    %27 = vector.shape_cast %19 : vector<2x16x16xf32> to vector<1x2x16x16xf32>
    %28 = vector.shape_cast %20 : vector<2x16x16xf32> to vector<1x2x16x16xf32>
    %29 = tpu.concatenate %21, %22, %23, %24, %25, %26, %27, %28 in 0 : vector<1x2x16x16xf32>, vector<1x2x16x16xf32>, vector<1x2x16x16xf32>, vector<1x2x16x16xf32>, vector<1x2x16x16xf32>, vector<1x2x16x16xf32>, vector<1x2x16x16xf32>, vector<1x2x16x16xf32> -> vector<8x2x16x16xf32>
    %30 = arith.truncf %29 : vector<8x2x16x16xf32> to vector<8x2x16x16xbf16>
    %31 = vector.shape_cast %30 : vector<8x2x16x16xbf16> to vector<16x16x16xbf16>
    %32 = vector.extract_strided_slice %10 {offsets = [0, 0, 0], sizes = [2, 16, 16], strides = [1, 1, 1]} : vector<2x16x128xf32> to vector<2x16x16xf32>
    %33 = vector.extract_strided_slice %10 {offsets = [0, 0, 16], sizes = [2, 16, 16], strides = [1, 1, 1]} : vector<2x16x128xf32> to vector<2x16x16xf32>
    %34 = vector.extract_strided_slice %10 {offsets = [0, 0, 32], sizes = [2, 16, 16], strides = [1, 1, 1]} : vector<2x16x128xf32> to vector<2x16x16xf32>
    %35 = vector.extract_strided_slice %10 {offsets = [0, 0, 48], sizes = [2, 16, 16], strides = [1, 1, 1]} : vector<2x16x128xf32> to vector<2x16x16xf32>
    %36 = vector.extract_strided_slice %10 {offsets = [0, 0, 64], sizes = [2, 16, 16], strides = [1, 1, 1]} : vector<2x16x128xf32> to vector<2x16x16xf32>
    %37 = vector.extract_strided_slice %10 {offsets = [0, 0, 80], sizes = [2, 16, 16], strides = [1, 1, 1]} : vector<2x16x128xf32> to vector<2x16x16xf32>
    %38 = vector.extract_strided_slice %10 {offsets = [0, 0, 96], sizes = [2, 16, 16], strides = [1, 1, 1]} : vector<2x16x128xf32> to vector<2x16x16xf32>
    %39 = vector.extract_strided_slice %10 {offsets = [0, 0, 112], sizes = [2, 16, 16], strides = [1, 1, 1]} : vector<2x16x128xf32> to vector<2x16x16xf32>
    %40 = vector.shape_cast %32 : vector<2x16x16xf32> to vector<1x2x16x16xf32>
    %41 = vector.shape_cast %33 : vector<2x16x16xf32> to vector<1x2x16x16xf32>
    %42 = vector.shape_cast %34 : vector<2x16x16xf32> to vector<1x2x16x16xf32>
    %43 = vector.shape_cast %35 : vector<2x16x16xf32> to vector<1x2x16x16xf32>
    %44 = vector.shape_cast %36 : vector<2x16x16xf32> to vector<1x2x16x16xf32>
    %45 = vector.shape_cast %37 : vector<2x16x16xf32> to vector<1x2x16x16xf32>
    %46 = vector.shape_cast %38 : vector<2x16x16xf32> to vector<1x2x16x16xf32>
    %47 = vector.shape_cast %39 : vector<2x16x16xf32> to vector<1x2x16x16xf32>
    %48 = tpu.concatenate %40, %41, %42, %43, %44, %45, %46, %47 in 0 : vector<1x2x16x16xf32>, vector<1x2x16x16xf32>, vector<1x2x16x16xf32>, vector<1x2x16x16xf32>, vector<1x2x16x16xf32>, vector<1x2x16x16xf32>, vector<1x2x16x16xf32>, vector<1x2x16x16xf32> -> vector<8x2x16x16xf32>
    %49 = arith.truncf %48 : vector<8x2x16x16xf32> to vector<8x2x16x16xbf16>
    %50 = vector.shape_cast %49 : vector<8x2x16x16xbf16> to vector<16x16x16xbf16>
    %51 = vector.extract_strided_slice %12 {offsets = [0, 0, 0], sizes = [2, 16, 16], strides = [1, 1, 1]} : vector<2x16x128xf32> to vector<2x16x16xf32>
    %52 = vector.extract_strided_slice %12 {offsets = [0, 0, 16], sizes = [2, 16, 16], strides = [1, 1, 1]} : vector<2x16x128xf32> to vector<2x16x16xf32>
    %53 = vector.extract_strided_slice %12 {offsets = [0, 0, 32], sizes = [2, 16, 16], strides = [1, 1, 1]} : vector<2x16x128xf32> to vector<2x16x16xf32>
    %54 = vector.extract_strided_slice %12 {offsets = [0, 0, 48], sizes = [2, 16, 16], strides = [1, 1, 1]} : vector<2x16x128xf32> to vector<2x16x16xf32>
    %55 = vector.extract_strided_slice %12 {offsets = [0, 0, 64], sizes = [2, 16, 16], strides = [1, 1, 1]} : vector<2x16x128xf32> to vector<2x16x16xf32>
    %56 = vector.extract_strided_slice %12 {offsets = [0, 0, 80], sizes = [2, 16, 16], strides = [1, 1, 1]} : vector<2x16x128xf32> to vector<2x16x16xf32>
    %57 = vector.extract_strided_slice %12 {offsets = [0, 0, 96], sizes = [2, 16, 16], strides = [1, 1, 1]} : vector<2x16x128xf32> to vector<2x16x16xf32>
    %58 = vector.extract_strided_slice %12 {offsets = [0, 0, 112], sizes = [2, 16, 16], strides = [1, 1, 1]} : vector<2x16x128xf32> to vector<2x16x16xf32>
    %59 = vector.shape_cast %51 : vector<2x16x16xf32> to vector<1x2x16x16xf32>
    %60 = vector.shape_cast %52 : vector<2x16x16xf32> to vector<1x2x16x16xf32>
    %61 = vector.shape_cast %53 : vector<2x16x16xf32> to vector<1x2x16x16xf32>
    %62 = vector.shape_cast %54 : vector<2x16x16xf32> to vector<1x2x16x16xf32>
    %63 = vector.shape_cast %55 : vector<2x16x16xf32> to vector<1x2x16x16xf32>
    %64 = vector.shape_cast %56 : vector<2x16x16xf32> to vector<1x2x16x16xf32>
    %65 = vector.shape_cast %57 : vector<2x16x16xf32> to vector<1x2x16x16xf32>
    %66 = vector.shape_cast %58 : vector<2x16x16xf32> to vector<1x2x16x16xf32>
    %67 = tpu.concatenate %59, %60, %61, %62, %63, %64, %65, %66 in 0 : vector<1x2x16x16xf32>, vector<1x2x16x16xf32>, vector<1x2x16x16xf32>, vector<1x2x16x16xf32>, vector<1x2x16x16xf32>, vector<1x2x16x16xf32>, vector<1x2x16x16xf32>, vector<1x2x16x16xf32> -> vector<8x2x16x16xf32>
    %68 = arith.truncf %67 : vector<8x2x16x16xf32> to vector<8x2x16x16xbf16>
    %69 = vector.shape_cast %68 : vector<8x2x16x16xbf16> to vector<16x16x16xbf16>
    "tpu.trace_start"() <{level = 10 : i32, message = "nqd,nkd->nqk"}> : () -> ()
    %cst_6 = arith.constant dense<0.000000e+00> : vector<16x16x16xf32>
    %70 = tpu.matmul %31, %50, %cst_6 {dimension_numbers = #tpu.dot_dimension_numbers<[2], [2], [1], [1], [0, 0, 0, 1, 1, 1], [0], [0]>} : vector<16x16x16xbf16>, vector<16x16x16xbf16>, vector<16x16x16xf32> -> vector<16x16x16xf32>
    "tpu.trace_stop"() : () -> ()
    %c0_7 = arith.constant 0 : index
    %c0_8 = arith.constant 0 : index
    %71 = vector.load %arg5[%c0_7, %c0_8] : memref<16x16xf32, #tpu.memory_space<vmem>>, vector<16x16xf32>
    %72 = vector.shape_cast %71 : vector<16x16xf32> to vector<1x16x16xf32>
    %73 = vector.broadcast %72 : vector<1x16x16xf32> to vector<16x16x16xf32>
    %74 = arith.addf %70, %73 : vector<16x16x16xf32>
    %c0_9 = arith.constant 0 : index
    %c0_10 = arith.constant 0 : index
    %c0_11 = arith.constant 0 : index
    %75 = vector.load %arg6[%c0_9, %c0_10, %c0_11] : memref<2x1x16xf32, #tpu.memory_space<vmem>>, vector<2x1x16xf32>
    %76 = tpu.concatenate %75, %75, %75, %75, %75, %75, %75, %75 in 0 : vector<2x1x16xf32>, vector<2x1x16xf32>, vector<2x1x16xf32>, vector<2x1x16xf32>, vector<2x1x16xf32>, vector<2x1x16xf32>, vector<2x1x16xf32>, vector<2x1x16xf32> -> vector<16x1x16xf32>
    %77 = vector.broadcast %76 : vector<16x1x16xf32> to vector<16x16x16xf32>
    %78 = arith.addf %74, %77 : vector<16x16x16xf32>
    %cst_12 = arith.constant dense<0xFF800000> : vector<16x16xf32>
    %79 = vector.multi_reduction <maximumf>, %78, %cst_12 [2] : vector<16x16x16xf32> to vector<16x16xf32>
    %80 = vector.shape_cast %79 : vector<16x16xf32> to vector<16x16x1xf32>
    %81 = vector.broadcast %80 : vector<16x16x1xf32> to vector<16x16x16xf32>
    %82 = arith.subf %78, %81 : vector<16x16x16xf32>
    %83 = math.exp %82 : vector<16x16x16xf32>
    %cst_13 = arith.constant dense<0.000000e+00> : vector<16x16xf32>
    %84 = vector.multi_reduction <add>, %83, %cst_13 [2] : vector<16x16x16xf32> to vector<16x16xf32>
    %85 = vector.shape_cast %84 : vector<16x16xf32> to vector<16x16x1xf32>
    %86 = tpu.reciprocal %85 {approx = true} : vector<16x16x1xf32> -> vector<16x16x1xf32>
    %87 = vector.broadcast %86 : vector<16x16x1xf32> to vector<16x16x16xf32>
    %88 = arith.mulf %83, %87 : vector<16x16x16xf32>
    %89 = arith.truncf %88 : vector<16x16x16xf32> to vector<16x16x16xbf16>
    "tpu.trace_start"() <{level = 10 : i32, message = "nqk,nkd->nqd"}> : () -> ()
    %cst_14 = arith.constant dense<0.000000e+00> : vector<16x16x16xf32>
    %90 = tpu.matmul %89, %69, %cst_14 {dimension_numbers = #tpu.dot_dimension_numbers<[2], [1], [1], [2], [0, 0, 0, 1, 1, 2], [0], [0]>} : vector<16x16x16xbf16>, vector<16x16x16xbf16>, vector<16x16x16xf32> -> vector<16x16x16xf32>
    "tpu.trace_stop"() : () -> ()
    %91 = arith.truncf %90 : vector<16x16x16xf32> to vector<16x16x16xbf16>
    %92 = vector.shape_cast %91 : vector<16x16x16xbf16> to vector<8x32x16xbf16>
    %cst_15 = arith.constant 0.000000e+00 : f32
    %93 = vector.broadcast %cst_15 : f32 to vector<32x128xf32>
    %94 = vector.extract_strided_slice %92 {offsets = [0, 0, 0], sizes = [1, 32, 16], strides = [1, 1, 1]} : vector<8x32x16xbf16> to vector<1x32x16xbf16>
    %95 = vector.shape_cast %94 : vector<1x32x16xbf16> to vector<32x16xbf16>
    %c0_16 = arith.constant 0 : index
    %c0_17 = arith.constant 0 : index
    %c0_18 = arith.constant 0 : index
    %96 = vector.load %arg4[%c0_16, %c0_17, %c0_18] : memref<8x16x128xbf16, #tpu.memory_space<vmem>>, vector<1x16x128xbf16>
    %97 = vector.shape_cast %96 : vector<1x16x128xbf16> to vector<16x128xbf16>
    %cst_19 = arith.constant dense<0.000000e+00> : vector<32x128xf32>
    %98 = tpu.matmul %95, %97, %cst_19 {dimension_numbers = #tpu.dot_dimension_numbers<[1], [0], [0], [1], [0, 0, 1, 1], [], []>} : vector<32x16xbf16>, vector<16x128xbf16>, vector<32x128xf32> -> vector<32x128xf32>
    %99 = arith.addf %93, %98 : vector<32x128xf32>
    %100 = vector.extract_strided_slice %92 {offsets = [1, 0, 0], sizes = [1, 32, 16], strides = [1, 1, 1]} : vector<8x32x16xbf16> to vector<1x32x16xbf16>
    %101 = vector.shape_cast %100 : vector<1x32x16xbf16> to vector<32x16xbf16>
    %c1 = arith.constant 1 : index
    %c0_20 = arith.constant 0 : index
    %c0_21 = arith.constant 0 : index
    %102 = vector.load %arg4[%c1, %c0_20, %c0_21] : memref<8x16x128xbf16, #tpu.memory_space<vmem>>, vector<1x16x128xbf16>
    %103 = vector.shape_cast %102 : vector<1x16x128xbf16> to vector<16x128xbf16>
    %cst_22 = arith.constant dense<0.000000e+00> : vector<32x128xf32>
    %104 = tpu.matmul %101, %103, %cst_22 {dimension_numbers = #tpu.dot_dimension_numbers<[1], [0], [0], [1], [0, 0, 1, 1], [], []>} : vector<32x16xbf16>, vector<16x128xbf16>, vector<32x128xf32> -> vector<32x128xf32>
    %105 = arith.addf %99, %104 : vector<32x128xf32>
    %106 = vector.extract_strided_slice %92 {offsets = [2, 0, 0], sizes = [1, 32, 16], strides = [1, 1, 1]} : vector<8x32x16xbf16> to vector<1x32x16xbf16>
    %107 = vector.shape_cast %106 : vector<1x32x16xbf16> to vector<32x16xbf16>
    %c2 = arith.constant 2 : index
    %c0_23 = arith.constant 0 : index
    %c0_24 = arith.constant 0 : index
    %108 = vector.load %arg4[%c2, %c0_23, %c0_24] : memref<8x16x128xbf16, #tpu.memory_space<vmem>>, vector<1x16x128xbf16>
    %109 = vector.shape_cast %108 : vector<1x16x128xbf16> to vector<16x128xbf16>
    %cst_25 = arith.constant dense<0.000000e+00> : vector<32x128xf32>
    %110 = tpu.matmul %107, %109, %cst_25 {dimension_numbers = #tpu.dot_dimension_numbers<[1], [0], [0], [1], [0, 0, 1, 1], [], []>} : vector<32x16xbf16>, vector<16x128xbf16>, vector<32x128xf32> -> vector<32x128xf32>
    %111 = arith.addf %105, %110 : vector<32x128xf32>
    %112 = vector.extract_strided_slice %92 {offsets = [3, 0, 0], sizes = [1, 32, 16], strides = [1, 1, 1]} : vector<8x32x16xbf16> to vector<1x32x16xbf16>
    %113 = vector.shape_cast %112 : vector<1x32x16xbf16> to vector<32x16xbf16>
    %c3 = arith.constant 3 : index
    %c0_26 = arith.constant 0 : index
    %c0_27 = arith.constant 0 : index
    %114 = vector.load %arg4[%c3, %c0_26, %c0_27] : memref<8x16x128xbf16, #tpu.memory_space<vmem>>, vector<1x16x128xbf16>
    %115 = vector.shape_cast %114 : vector<1x16x128xbf16> to vector<16x128xbf16>
    %cst_28 = arith.constant dense<0.000000e+00> : vector<32x128xf32>
    %116 = tpu.matmul %113, %115, %cst_28 {dimension_numbers = #tpu.dot_dimension_numbers<[1], [0], [0], [1], [0, 0, 1, 1], [], []>} : vector<32x16xbf16>, vector<16x128xbf16>, vector<32x128xf32> -> vector<32x128xf32>
    %117 = arith.addf %111, %116 : vector<32x128xf32>
    %118 = vector.extract_strided_slice %92 {offsets = [4, 0, 0], sizes = [1, 32, 16], strides = [1, 1, 1]} : vector<8x32x16xbf16> to vector<1x32x16xbf16>
    %119 = vector.shape_cast %118 : vector<1x32x16xbf16> to vector<32x16xbf16>
    %c4 = arith.constant 4 : index
    %c0_29 = arith.constant 0 : index
    %c0_30 = arith.constant 0 : index
    %120 = vector.load %arg4[%c4, %c0_29, %c0_30] : memref<8x16x128xbf16, #tpu.memory_space<vmem>>, vector<1x16x128xbf16>
    %121 = vector.shape_cast %120 : vector<1x16x128xbf16> to vector<16x128xbf16>
    %cst_31 = arith.constant dense<0.000000e+00> : vector<32x128xf32>
    %122 = tpu.matmul %119, %121, %cst_31 {dimension_numbers = #tpu.dot_dimension_numbers<[1], [0], [0], [1], [0, 0, 1, 1], [], []>} : vector<32x16xbf16>, vector<16x128xbf16>, vector<32x128xf32> -> vector<32x128xf32>
    %123 = arith.addf %117, %122 : vector<32x128xf32>
    %124 = vector.extract_strided_slice %92 {offsets = [5, 0, 0], sizes = [1, 32, 16], strides = [1, 1, 1]} : vector<8x32x16xbf16> to vector<1x32x16xbf16>
    %125 = vector.shape_cast %124 : vector<1x32x16xbf16> to vector<32x16xbf16>
    %c5 = arith.constant 5 : index
    %c0_32 = arith.constant 0 : index
    %c0_33 = arith.constant 0 : index
    %126 = vector.load %arg4[%c5, %c0_32, %c0_33] : memref<8x16x128xbf16, #tpu.memory_space<vmem>>, vector<1x16x128xbf16>
    %127 = vector.shape_cast %126 : vector<1x16x128xbf16> to vector<16x128xbf16>
    %cst_34 = arith.constant dense<0.000000e+00> : vector<32x128xf32>
    %128 = tpu.matmul %125, %127, %cst_34 {dimension_numbers = #tpu.dot_dimension_numbers<[1], [0], [0], [1], [0, 0, 1, 1], [], []>} : vector<32x16xbf16>, vector<16x128xbf16>, vector<32x128xf32> -> vector<32x128xf32>
    %129 = arith.addf %123, %128 : vector<32x128xf32>
    %130 = vector.extract_strided_slice %92 {offsets = [6, 0, 0], sizes = [1, 32, 16], strides = [1, 1, 1]} : vector<8x32x16xbf16> to vector<1x32x16xbf16>
    %131 = vector.shape_cast %130 : vector<1x32x16xbf16> to vector<32x16xbf16>
    %c6 = arith.constant 6 : index
    %c0_35 = arith.constant 0 : index
    %c0_36 = arith.constant 0 : index
    %132 = vector.load %arg4[%c6, %c0_35, %c0_36] : memref<8x16x128xbf16, #tpu.memory_space<vmem>>, vector<1x16x128xbf16>
    %133 = vector.shape_cast %132 : vector<1x16x128xbf16> to vector<16x128xbf16>
    %cst_37 = arith.constant dense<0.000000e+00> : vector<32x128xf32>
    %134 = tpu.matmul %131, %133, %cst_37 {dimension_numbers = #tpu.dot_dimension_numbers<[1], [0], [0], [1], [0, 0, 1, 1], [], []>} : vector<32x16xbf16>, vector<16x128xbf16>, vector<32x128xf32> -> vector<32x128xf32>
    %135 = arith.addf %129, %134 : vector<32x128xf32>
    %136 = vector.extract_strided_slice %92 {offsets = [7, 0, 0], sizes = [1, 32, 16], strides = [1, 1, 1]} : vector<8x32x16xbf16> to vector<1x32x16xbf16>
    %137 = vector.shape_cast %136 : vector<1x32x16xbf16> to vector<32x16xbf16>
    %c7 = arith.constant 7 : index
    %c0_38 = arith.constant 0 : index
    %c0_39 = arith.constant 0 : index
    %138 = vector.load %arg4[%c7, %c0_38, %c0_39] : memref<8x16x128xbf16, #tpu.memory_space<vmem>>, vector<1x16x128xbf16>
    %139 = vector.shape_cast %138 : vector<1x16x128xbf16> to vector<16x128xbf16>
    %cst_40 = arith.constant dense<0.000000e+00> : vector<32x128xf32>
    %140 = tpu.matmul %137, %139, %cst_40 {dimension_numbers = #tpu.dot_dimension_numbers<[1], [0], [0], [1], [0, 0, 1, 1], [], []>} : vector<32x16xbf16>, vector<16x128xbf16>, vector<32x128xf32> -> vector<32x128xf32>
    %141 = arith.addf %135, %140 : vector<32x128xf32>
    %142 = vector.shape_cast %141 : vector<32x128xf32> to vector<2x16x128xf32>
    %c0_41 = arith.constant 0 : index
    %c0_42 = arith.constant 0 : index
    %c0_43 = arith.constant 0 : index
    %143 = vector.load %arg7[%c0_41, %c0_42, %c0_43] : memref<2x16x128xf32, #tpu.memory_space<vmem>>, vector<2x16x128xf32>
    tpu.vector_store %arg7[%c0_41, %c0_42, %c0_43], %142 {strides = array<i32>} : memref<2x16x128xf32, #tpu.memory_space<vmem>>, vector<2x16x128xf32>,
    return
  }
  func.func @transform_0(%arg0: i32) -> (i32, i32, i32) {
    %c0_i32 = arith.constant 0 : i32
    %c0_i32_0 = arith.constant 0 : i32
    %c0_i32_1 = arith.constant 0 : i32
    return %arg0, %c0_i32, %c0_i32_0 : i32, i32, i32
  }
  func.func @transform_1(%arg0: i32) -> (i32, i32) {
    %c0_i32 = arith.constant 0 : i32
    %c0_i32_0 = arith.constant 0 : i32
    %c0_i32_1 = arith.constant 0 : i32
    return %c0_i32, %c0_i32_0 : i32, i32
  }
  func.func @transform_2(%arg0: i32) -> (i32, i32) {
    %c0_i32 = arith.constant 0 : i32
    %c0_i32_0 = arith.constant 0 : i32
    %c0_i32_1 = arith.constant 0 : i32
    return %c0_i32, %c0_i32_0 : i32, i32
  }
  func.func @transform_3(%arg0: i32) -> (i32, i32, i32) {
    %c0_i32 = arith.constant 0 : i32
    %c0_i32_0 = arith.constant 0 : i32
    %c0_i32_1 = arith.constant 0 : i32
    %c0_i32_2 = arith.constant 0 : i32
    return %c0_i32, %c0_i32_0, %c0_i32_1 : i32, i32, i32
  }
  func.func @transform_4(%arg0: i32) -> (i32, i32) {
    %c0_i32 = arith.constant 0 : i32
    %c0_i32_0 = arith.constant 0 : i32
    %c0_i32_1 = arith.constant 0 : i32
    return %c0_i32, %c0_i32_0 : i32, i32
  }
  func.func @transform_5(%arg0: i32) -> (i32, i32, i32) {
    %c0_i32 = arith.constant 0 : i32
    %c0_i32_0 = arith.constant 0 : i32
    %c0_i32_1 = arith.constant 0 : i32
    return %arg0, %c0_i32, %c0_i32_0 : i32, i32, i32
  }
  func.func @transform_6(%arg0: i32) -> (i32, i32, i32) {
    %c0_i32 = arith.constant 0 : i32
    %c0_i32_0 = arith.constant 0 : i32
    %c0_i32_1 = arith.constant 0 : i32
    return %arg0, %c0_i32, %c0_i32_0 : i32, i32, i32
  }
}

</mosaic_0001>

<bundles_post_ra>
// kernel: tpu_custom_call.1
= control target key start
LH: loop header
LB: loop body
LE: loop exit
PB: predicated region body
PF: predicated region fallthrough
CT: control target
= control target key end

     0   :  { %11 = vsyncpa [#allocation3], 0  ;;  %s5595_s0 = inlined_call_operand.hbm [shape: bf16[4,16,128], index: 0, kind: input, shape index: {}]   ;;  %s5596_s1 = inlined_call_operand.hbm [shape: bf16[128,384], index: 1, kind: input, shape index: {}]   ;;  %s5597_s2 = inlined_call_operand.vmem [shape: f32[1,384], index: 2, kind: input, shape index: {}]   ;;  %s5598_s3 = inlined_call_operand.hbm [shape: bf16[8,16,128], index: 3, kind: input, shape index: {}]   ;;  %s5599_s4 = inlined_call_operand.hbm [shape: f32[16,16], index: 4, kind: input, shape index: {}]   ;;  %s5600_s5 = inlined_call_operand.vmem [shape: f32[4,1,16], index: 5, kind: input, shape index: {}]   ;;  %s5601_s6 = inlined_call_operand.hbm [shape: f32[4,16,128], index: 6, kind: output, shape index: {}]  }
   0x1   :  { %13 = vsyncpa [#allocation3 + $0x1], 0 }
   0x2   :  { %14 = vsyncpa [#allocation6], 0 }
   0x3   :  { %15 = vsyncpa [#allocation9], 0 }
   0x4   :  { %16 = vsyncpa [#allocation4], 0 }
   0x5   :  { %18 = vsyncpa [#allocation4 + $0x1], 0  ;;  %s4680_s21 = smov 0   ;;  %s4682_s22 = smov 0  }
   0x6   :  { %s4684_s23 = smov 0   ;;  %s4686_s24 = smov 0  }
   0x7 LB: > { %s4701_s25 = sadd.s32 4294967295, %s4620_s24   ;;  %s3498_s26 = sadd.s32 4294967294, %s4620_s24   ;;  %s4620_s24 = sphi %s4686_s24, %s5629_s24   ;;  %s4616_s23 = sphi %s4684_s23, %s5628_s23   ;;  %s4612_s22 = sphi %s4682_s22, %s5627_s22   ;;  %s4608_s21 = sphi %s4680_s21, %s5626_s21  }
   0x8   : > { %p44_p0 = scmp.ne.s32.totalorder %s4612_s22, %s4608_s21  ;;  %p5602_p1 = scmp.eq.s32.totalorder %s4701_s25, 0 }
   0x9   : > { %p184_p3 = scmp.eq.s32.totalorder %s3498_s26, 1  ;;  %p3499_p5 = scmp.ge.s32.totalorder %s4620_s24, 1 }
   0xa   : > { %p4710_p4 = por %p5602_p1, %p44_p0  ;;  %p191_p7 = scmp.lt.s32.totalorder %s4620_s24, 3 }
   0xb   : > { %p4715_p6 = por %p184_p3, %p44_p0  ;;  %s4622_s30 = smov [#allocation5]  }
   0xc   : > { %s5608_s27 = scalar_select %p4710_p4, 1, 0 }
   0xd   : > { %s5609_s28 = scalar_select %p4715_p6, 1, 0 }
   0xe   : > { %p4720_p8 = pnand %p3499_p5, %p191_p7  ;;  %s203_s7 = sshll.u32 %s4622_s30, 4  ;;  %s204_s7 = int_to_ptr.vmem [resolvable:$true] %s203_s7 }
   0xf   : > { %s4623_s9 = smov [#allocation7]   ;;  %s4453_s11 = scalar_lea.vmem %s204_s7, 3072 }
  0x10   : > { %s5610_s29 = scalar_select %p4720_p8, 1, 0 }
  0x11   : > { %p3983_p9 = pneg %p4720_p8  ;;  %s219_s10 = sshll.u32 %s4623_s9, 4  ;;  %s220_s10 = int_to_ptr.vmem [resolvable:$true] %s219_s10 }
  0x12   : > { %p4454_p13 = scmp.ne.s32.totalorder %s204_s7, %s4453_s11  ;;  %p4461_p5 = scmp.lt.s32.totalorder %s204_s7, %s204_s7 }
  0x13   : > { %p4729_p11 = pnand %p3983_p9, %p5602_p1  ;;  %p4462_p7 = scmp.lt.s32.totalorder %s4453_s11, %s4453_s11 }
  0x15   : > { %p4444_p12 = pneg %p4729_p11  ;;  %p4463_p10 = por %p4462_p7, %p4461_p5 }
  0x17   : > { %p4456_p0 = pnand %p4454_p13, %p4444_p12 }
  0x19   : > { %p4457_p3 = pneg %p4456_p0 }
  0x1b   : > { %p4464_p9 = pnand %p4463_p10, %p4457_p3 }
  0x1d   : > { %4467 = shalt.err (!%p4464_p9)
}
  0x1e   : > { %s4624_s12 = smov 192   ;;  %s4625_s13 = smov 12  }
  0x1f   : > { %3986 = dma.hbm_to_vmem [thread:$0]  (!%p4729_p11), %s5596_s1, 3072, %s204_s7, [#allocation6], %s4624_s12, %s4624_s12, %s4625_s13  }
  0x20   : > { %s4479_s16 = scalar_lea.vmem %s220_s10, 1024  ;;  %p4487_p2 = scmp.lt.s32.totalorder %s220_s10, %s220_s10 }
  0x21   : > { %p4480_p1 = scmp.ne.s32.totalorder %s220_s10, %s4479_s16  ;;  %p4488_p6 = scmp.lt.s32.totalorder %s4479_s16, %s4479_s16 }
  0x23   : > { %p4482_p13 = pnand %p4480_p1, %p4444_p12  ;;  %p4489_p5 = por %p4488_p6, %p4487_p2 }
  0x25   : > { %p4483_p0 = pneg %p4482_p13 }
  0x27   : > { %p4490_p10 = pnand %p4489_p5, %p4483_p0 }
  0x29   : > { %4493 = shalt.err (!%p4490_p10)
}
  0x2a   : > { %s5603_s17 = smov 64   ;;  %s5604_s18 = smov 4  }
  0x2b   : > { %3989 = dma.hbm_to_vmem [thread:$0]  (!%p4729_p11), %s5598_s3, 1024, %s220_s10, [#allocation6], %s5603_s17, %s5603_s17, %s5604_s18  }
  0x2c   : > { %s4628_s26 = smov [#allocation8]  }
  0x2d   : > { %s232_s30 = sshll.u32 %s4628_s26, 4  ;;  %s233_s30 = int_to_ptr.vmem [resolvable:$true] %s232_s30 }
  0x2e   : > { %s4505_s7 = scalar_lea.vmem %s233_s30, 256  ;;  %p4513_p3 = scmp.lt.s32.totalorder %s233_s30, %s233_s30 }
  0x2f   : > { %p4506_p1 = scmp.ne.s32.totalorder %s233_s30, %s4505_s7  ;;  %p4514_p7 = scmp.lt.s32.totalorder %s4505_s7, %s4505_s7 }
  0x31   : > { %p4508_p2 = pnand %p4506_p1, %p4444_p12  ;;  %p4515_p9 = por %p4514_p7, %p4513_p3 }
  0x33   : > { %p4509_p6 = pneg %p4508_p2 }
  0x35   : > { %p4516_p13 = pnand %p4515_p9, %p4509_p6 }
  0x37   : > { %4519 = shalt.err (!%p4516_p13)
}
  0x38   : > { %s4629_s9 = smov 128   ;;  %s4630_s10 = smov 8  }
  0x39   : > { %3992 = dma.hbm_to_vmem [thread:$0]  (!%p4729_p11), %s5599_s4, 256, %s233_s30, [#allocation9], %s4629_s9, %s4629_s9, %s4630_s10  }
  0x3a   : > { %s4763_s13 = sadd.s32 1, %s4620_s24   ;;  %s31_s15 = sadd.s32 1, %s4616_s23 }
  0x3b   : > { %s28_s14 = ssub.s32 %s4620_s24, %s4763_s13  ;;  %p38_p0 = scmp.ne.s32.totalorder %s4616_s23, %s4612_s22 }
  0x3c   : > { %p29_p12 = scmp.eq.s32.totalorder %s28_s14, 0  ;;  %p39_p5 = scmp.eq.s32.totalorder %s4620_s24, 0 }
  0x3d   : > { %p4004_p10 = scmp.lt.s32.totalorder %s4620_s24, 2  ;;  %p5612_p2 = scmp.eq.s32.totalorder %s4701_s25, 1 }
  0x3e   : > { %s4773_s16 = scalar_select %p29_p12, %s4616_s23, %s31_s15  }
  0x3f   : > { %p40_p1 = por %p39_p5, %p38_p0  ;;  %p4777_p6 = por %p5612_p2, %p38_p0 }
  0x40   : > { %s246_s8 = sand.u32 1, %s4616_s23   ;;  %s3606_s20 = sshll.u32 %s4620_s24, 8 }
  0x41   : > { %s5613_s19 = scalar_select %p4777_p6, 1, 0 }
  0x42   : > { %s3504_s26 = sshll.u32 %s246_s8, 4  ;;  %s4786_s9 = scalar_lea.hbm %s5595_s0, %s3606_s20 }
  0x43   : > { %s250_s10 = scalar_lea.vmem [#allocation2], %s3504_s26  ;;  %p4788_p11 = pnand %p4004_p10, %p40_p1 }
  0x44   : > { %s258_s11 = sshll.u32 %s250_s10, 4  ;;  %s4794_s14 = scalar_lea.sflag [#allocation3], %s246_s8  ;;  %s4792_s11 = int_to_ptr.vmem [resolvable:$true] %s258_s11 }
  0x45   : > { %s4520_s15 = scalar_lea.hbm %s4786_s9, 256  ;;  %p4522_p7 = pneg %p4788_p11 }
  0x46   : > { %p4521_p3 = scmp.ne.s32.totalorder %s4786_s9, %s4520_s15  ;;  %s4525_s26 = scalar_lea.hbm %s5595_s0, 512 }
  0x47   : > { %p4526_p12 = scmp.lt.s32.totalorder %s4786_s9, %s5595_s0  ;;  %p4527_p0 = scmp.lt.s32.totalorder %s4525_s26, %s4520_s15 }
  0x48   : > { %p4523_p9 = pnand %p4522_p7, %p4521_p3 }
  0x49   : > { %p4528_p5 = por %p4527_p0, %p4526_p12 }
  0x4a   : > { %p4524_p13 = pneg %p4523_p9 }
  0x4c   : > { %p4529_p10 = pnand %p4528_p5, %p4524_p13 }
  0x4e   : > { %4532 = shalt.err (!%p4529_p10)
}
  0x4f   : > { %s4533_s8 = scalar_lea.vmem %s4792_s11, 256  ;;  %s4631_s17 = smov [#allocation2]  }
  0x50   : > { %p4534_p1 = scmp.ne.s32.totalorder %s4792_s11, %s4533_s8  ;;  %s4538_s18 = sshll.u32 %s4631_s17, 4  ;;  %s4539_s18 = int_to_ptr.vmem [resolvable:$false] %s4538_s18 }
  0x51   : > { %s4540_s20 = scalar_lea.vmem %s4539_s18, 512  ;;  %p4541_p9 = scmp.lt.s32.totalorder %s4792_s11, %s4539_s18 }
  0x52   : > { %p4536_p2 = pnand %p4534_p1, %p4522_p7  ;;  %p4542_p6 = scmp.lt.s32.totalorder %s4540_s20, %s4533_s8 }
  0x54   : > { %p4537_p3 = pneg %p4536_p2  ;;  %p4543_p4 = por %p4542_p6, %p4541_p9 }
  0x56   : > { %p4544_p8 = pnand %p4543_p4, %p4537_p3 }
  0x58   : > { %4547 = shalt.err (!%p4544_p8)
}
  0x59   : > { %s5615_s15 = smov 4   ;;  %s5616_s30 = smov 64  }
  0x5a   : > { %3996 = dma.hbm_to_vmem [thread:$0]  (!%p4788_p11), %s4786_s9, 256, %s4792_s11, %s4794_s14, %s5616_s30, %s5616_s30, %s5615_s15  }
  0x5b   : > { %p5617_p7 = scmp.ne.s32.totalorder %s5610_s29, 0 }
  0x5c   : > { %s4821_s17 = sand.u32 (!%p5617_p7), 1, %s4612_s22   ;;  %p5618_p4 = scmp.ne.s32.totalorder (!%p5617_p7), %s5608_s27, 0 }
  0x5d   : > { %278 = sbr.rel (%p5617_p7) target bundleno = 1520 (0x5f0), region = 44  ;;  %s3509_s18 = sshll.u32 (!%p5617_p7), %s4821_s17, 4 }
  0x5e   : > { %s281_s26 = scalar_lea.sflag (!%p5617_p7), [#allocation3], %s4821_s17  ;;  %s4825_s7 = scalar_lea.vmem (!%p5617_p7), [#allocation2], %s3509_s18 }
  0x62   : > { %4591 = dma.done.wait (%p5618_p4), %s281_s26, 256  }
  0x63   : > { %4593 = vsyncadd (%p5618_p4), %s281_s26, 4294967040  ;;  %p5619_p8 = scmp.eq.s32.totalorder %s4701_s25, 0 }
  0x65   : > { %4595 = dma.done.wait (%p5619_p8), [#allocation6], 4096   ;;  %p5620_p6 = pmov %p5619_p8 }
  0x67   : > { %4597 = vsyncadd (%p5620_p6), [#allocation6], 4294963200  ;;  %p5621_p11 = pmov %p5620_p6 }
  0x68   : > { %p5622_p13 = pmov %p5620_p6 }
  0x69   : > { %4599 = dma.done.wait (%p5621_p11), [#allocation9], 256  }
  0x6a   : > { %4601 = vsyncadd (%p5622_p13), [#allocation9], 4294967040  ;;  %v4632_v0 = vmov 0   ;;  %v4272_v1 = vld [vmem:[#allocation5 + $0xac] ss:$12 sps:$4 sm:$0xff]   ;;  %v4296_v9 = vld [vmem:[%s4825_s7] sm:$0xff]   ;;  %v375_v28 = vlaneseq }
  0x6b   : > { %562 = vmatprep.mubr.bf16.mxu0 %v4632_v0  ;;  %v4274_v2 = vld [vmem:[#allocation5 + $0xa8] ss:$12 sps:$4 sm:$0xff]   ;;  %530 = vmatprep.subr.bf16.mxu0 %v4272_v1  ;;  %v4277_v4 = vld [vmem:[#allocation5 + $0x90] ss:$12 sps:$4 sm:$0xff]   ;;  %v4280_v6 = vld [vmem:[#allocation5 + $0x78] ss:$12 sps:$4 sm:$0xff]  }
  0x6c   : > { %v4275_v3 = vld [vmem:[#allocation5 + $0x94] ss:$12 sps:$4 sm:$0xff]   ;;  %531 = vmatpush1.bf16.msra.mxu0 %v4274_v2  ;;  %v4278_v5 = vld [vmem:[#allocation5 + $0x7c] ss:$12 sps:$4 sm:$0xff]   ;;  %v4281_v7 = vld [vmem:[#allocation5 + $0x64] ss:$12 sps:$4 sm:$0xff]   ;;  %3723 = vmatprep.mubr.bf16.mxu1 %v4296_v9 }
  0x6d   : > { %532 = vmatprep.subr.bf16.mxu0 %v4275_v3  ;;  %v4283_v8 = vld [vmem:[#allocation5 + $0x60] ss:$12 sps:$4 sm:$0xff]   ;;  %v4298_v11 = vld [vmem:[#allocation5 + $0xb0] ss:$12 sps:$4 sm:$0xff]   ;;  %v4299_v12 = vld [vmem:[#allocation5 + $0x98] ss:$12 sps:$4 sm:$0xff]  }
  0x6e   : > { %v4284_v10 = vld [vmem:[#allocation5 + $0x4c] ss:$12 sps:$4 sm:$0xff]   ;;  %v4286_v13 = vld [vmem:[#allocation5 + $0x48] ss:$12 sps:$4 sm:$0xff]   ;;  %3707 = vmatprep.subr.bf16.mxu1 %v4298_v11  ;;  %v4289_v16 = vld [vmem:[#allocation5 + $0x30] ss:$12 sps:$4 sm:$0xff]  }
  0x6f   : > { %v4287_v14 = vld [vmem:[#allocation5 + $0x34] ss:$12 sps:$4 sm:$0xff]   ;;  %3708 = vmatpush3.bf16.msra.mxu1 %v4298_v11  ;;  %v4290_v17 = vld [vmem:[#allocation5 + $0x1c] ss:$12 sps:$4 sm:$0xff]   ;;  %v4292_v19 = vld [vmem:[#allocation5 + $0x18] ss:$12 sps:$4 sm:$0xff]  }
  0x70   : > { %533 = vmatpush1.bf16.msra.mxu0 %v4277_v4  ;;  %3709 = vmatprep.subr.bf16.mxu1 %v4299_v12  ;;  %v4300_v15 = vld [vmem:[#allocation5 + $0x80] ss:$12 sps:$4 sm:$0xff]   ;;  %v4301_v18 = vld [vmem:[#allocation5 + $0x68] ss:$12 sps:$4 sm:$0xff]   ;;  %v4293_v20 = vld [vmem:[#allocation5 + $0x4] ss:$12 sps:$4 sm:$0xff]  }
  0x71   : > { %534 = vmatprep.subr.bf16.mxu0 %v4278_v5  ;;  %v4302_v21 = vld [vmem:[#allocation5 + $0x50] ss:$12 sps:$4 sm:$0xff]   ;;  %v4295_v22 = vld [vmem:[#allocation5] ss:$12 sps:$4 sm:$0xff]   ;;  %v4303_v23 = vld [vmem:[#allocation5 + $0x38] ss:$12 sps:$4 sm:$0xff]  }
  0x72   : > { %v4304_v24 = vld [vmem:[#allocation5 + $0x20] ss:$12 sps:$4 sm:$0xff]   ;;  %v4305_v25 = vld [vmem:[#allocation5 + $0x8] ss:$12 sps:$4 sm:$0xff]   ;;  %v4633_v27 = vmov 0.0   ;;  %vm4634_vm0 = vmmov 0  }
  0x73   : > { %3710 = vmatpush3.bf16.msra.mxu1 %v4299_v12  ;;  %v4297_v26 = vld [vmem:[%s4825_s7 + $0x8] sm:$0xff]   ;;  %v4847_v29 = vshrl.u32 %v375_v28, 7  ;;  %v4853_v31 = vld [vmem:[%s5597_s2] sm:$0x7]  ;;  %vm946_vm1 = vcmask 130048   ;;  %s4635_s9 = smov 112  }
  0x74   : > { %535 = vmatpush1.bf16.msra.mxu0 %v4280_v6  ;;  %3711 = vmatprep.subr.bf16.mxu1 %v4300_v15  ;;  %s4636_s11 = smov 96   ;;  %s4637_s12 = smov 80  }
  0x75   : > { %536 = vmatprep.subr.bf16.mxu0 %v4281_v7  ;;  %v377_v30 = vsub.s32 0, %v4847_v29  ;;  %v381_v32 = vsub.s32 1, %v4847_v29  ;;  %s4638_s14 = smov 64   ;;  %s4639_s10 = smov 48   ;;  %v385_v63 = vsub.s32 2, %v4847_v29 }
  0x76   : > { %s4640_s8 = smov 32   ;;  %s4641_s20 = smov 16  }
  0x77   : > { %3712 = vmatpush3.bf16.msra.mxu1 %v4300_v15  ;;  %v378_v34 = vrot.slane %v4853_v31, %v377_v30  ;;  %v382_v36 = vrot.slane %v4853_v31, %v381_v32  ;;  %v386_v1 = vrot.slane %v4853_v31, %v385_v63  ;;  %s3514_s15 = sshll.u32 %s4701_s25, 1  ;;  %s3513_s7 = sshll.u32 %s4821_s17, 5 }
  0x78   : > { %537 = vmatpush1.bf16.msra.mxu0 %v4283_v8  ;;  %3713 = vmatprep.subr.bf16.mxu1 %v4301_v18  ;;  %p331_p12 = scmp.lt.s32.totalorder %s3514_s15, 3  ;;  %s328_s27 = scalar_lea.vmem [#allocation10], %s3513_s7 }
  0x79   : > { %538 = vmatprep.subr.bf16.mxu0 %v4284_v10  ;;  %s3387_s29 = sshll.u32 %s328_s27, 4  ;;  %p5623_p5 = scmp.ne.s32.totalorder %s5613_s19, 0  ;;  %s5547_s29 = int_to_ptr.vmem [resolvable:$true] %s3387_s29 }
  0x7a   : > { %s5631_s15 = smov (!%p331_p12, %s3514_s15), 3 }
  0x7b   : > { %3714 = vmatpush3.bf16.msra.mxu1 %v4301_v18  ;;  %s333_s26 = scalar_lea.vmem %s5600_s5, %s5631_s15 }
  0x7c   : > { %539 = vmatpush1.bf16.msra.mxu0 %v4286_v13  ;;  %3715 = vmatprep.subr.bf16.mxu1 %v4302_v21 }
  0x7d   : > { %540 = vmatprep.subr.bf16.mxu0 %v4287_v14 }
  0x7f   : > { %3716 = vmatpush3.bf16.msra.mxu1 %v4302_v21 }
  0x80   : > { %541 = vmatpush1.bf16.msra.mxu0 %v4289_v16  ;;  %3717 = vmatprep.subr.bf16.mxu1 %v4303_v23 }
  0x81   : > { %542 = vmatprep.subr.bf16.mxu0 %v4290_v17 }
  0x83   : > { %3718 = vmatpush3.bf16.msra.mxu1 %v4303_v23 }
  0x84   : > { %543 = vmatpush1.bf16.msra.mxu0 %v4292_v19  ;;  %3719 = vmatprep.subr.bf16.mxu1 %v4304_v24 }
  0x85   : > { %544 = vmatprep.subr.bf16.mxu0 %v4293_v20 }
  0x87   : > { %3720 = vmatpush3.bf16.msra.mxu1 %v4304_v24 }
  0x88   : > { %545 = vmatpush1.bf16.msra.mxu0 %v4295_v22  ;;  %3721 = vmatprep.subr.bf16.mxu1 %v4305_v25 }
  0x89   : > { %3733 = vmatprep.subr.bf16.mxu0 %v4633_v27 }
  0x8b   : > { %563 = vmatmul.mubr.bf16.vlgmr.msra.gmra.mxu0 %v4296_v9  ;;  %3722 = vmatpush3.bf16.msra.mxu1 %v4305_v25 }
  0x8c   : > { %572 = vmatprep.mubr.bf16.mxu0 %v4632_v0  ;;  %3727 = vmatprep.subr.bf16.mxu1 %v4633_v27 }
  0x8e   : > { %3724 = vmatmul.mubr.bf16.vlgmr.msra.gmra.mxu1 %v4297_v26 }
  0x8f   : > { %3729 = vmatprep.mubr.msk.bf16.mxu1 %vm4634_vm0, %v4633_v27 }
  0x93   : > { %573 = vmatmul.mubr.bf16.gmra.mxu0 %v4297_v26 }
  0x94   : > { %3735 = vmatprep.mubr.msk.bf16.mxu0 %vm4634_vm0, %v4633_v27 }
 0x14b   : > { %v564_v33 = vpop.f32.mrf.mxu0 }
 0x14c   : > { %v565_v38 = vadd.f32 %v564_v33, %v378_v34 }
 0x14d   : > { %v566_v35 = vpop.f32.mrf.mxu0 }
 0x14e   : > { %v567_v41 = vadd.f32 %v566_v35, %v382_v36  ;;  %v3725_v61 = vpop.f32.mrf.mxu1 }
 0x14f   : > { %v568_v37 = vpop.f32.mrf.mxu0  ;;  %v4903_v3 = vadd.f32 %v3725_v61, %v386_v1 }
 0x150   : > { %v569_v39 = vadd.f32 %v568_v37, %v378_v34  ;;  %v617_v62 = vpop.f32.mrf.mxu1 }
 0x151   : > { %v570_v40 = vpop.f32.mrf.mxu0  ;;  %v4905_v4 = vadd.f32 %v617_v62, %v386_v1 }
 0x152   : > { %v571_v42 = vadd.f32 %v570_v40, %v382_v36  ;;  %v4858_v43 = vpack.i.bf16 %v569_v39, %v565_v38  ;;  %v720_v56 = vpack.c.bf16 %v569_v39, %v565_v38  ;;  %v3726_v0 = vpop.f32.mrf.mxu1 }
 0x153   : > { %v574_v44 = vpop.f32.mrf.mxu0  ;;  %v4907_v5 = vadd.f32 %v3726_v0, %v386_v1 }
 0x154   : > { %4073 = vrot.lane.b32.xlu1 %v4858_v43, %s4635_s9  ;;  %v4862_v45 = vpack.i.bf16 %v571_v42, %v567_v41  ;;  %v824_v46 = vpack.c.bf16 %v571_v42, %v567_v41  ;;  %v575_v57 = vadd.f32 %v574_v44, %v378_v34  ;;  %v620_v2 = vpop.f32.mrf.mxu1 }
 0x155   : > { %v576_v47 = vpop.f32.mrf.mxu0  ;;  %v4909_v6 = vadd.f32 %v620_v2, %v386_v1  ;;  %v929_v8 = vpack.c.bf16 %v4907_v5, %v4903_v3  ;;  %v4920_v9 = vpack.i.bf16 %v4907_v5, %v4903_v3 }
 0x156   : > { %4063 = vrot.lane.b32.xlu0 %v4862_v45, %s4635_s9  ;;  %v951_v48 = vsel %vm946_vm1, %v824_v46, 0  ;;  %v577_v51 = vadd.f32 %v576_v47, %v382_v36 }
 0x157   : > { %v578_v49 = vpop.f32.mrf.mxu0  ;;  %3728 = vmatpush3.bf16.xpose.msra.mxu1 %v951_v48  ;;  %v928_v7 = vpack.c.bf16 %v4909_v6, %v4905_v4  ;;  %v4924_v10 = vpack.i.bf16 %v4909_v6, %v4905_v4  ;;  %v5030_v4 = vld [vmem:[#allocation8] sm:$0xff] }
 0x158   : > { %4078 = vrot.lane.b32.xlu1 %v4862_v45, %s4636_s11  ;;  %3739 = vmatprep.subr.bf16.mxu1 %v4633_v27  ;;  %v579_v53 = vadd.f32 %v578_v49, %v378_v34 }
 0x159   : > { %v580_v50 = vpop.f32.mrf.mxu0 }
 0x15a   : > { %v581_v52 = vadd.f32 %v580_v50, %v382_v36  ;;  %v4082_v59 = vpack.i.bf16 %v579_v53, %v575_v57  ;;  %v721_v60 = vpack.c.bf16 %v579_v53, %v575_v57 }
 0x15c   : > { %v4067_v54 = vpack.i.bf16 %v581_v52, %v577_v51  ;;  %v825_v55 = vpack.c.bf16 %v581_v52, %v577_v51 }
 0x15e   : > { %4068 = vrot.lane.b32.xlu0 %v4067_v54, %s4635_s9  ;;  %4093 = vrot.lane.b32.xlu1 %v4067_v54, %s4636_s11  ;;  %v998_v58 = vsel %vm946_vm1, %v825_v55, 0 }
 0x15f   : > { %3730 = vmatmul.mubr.msk.bf16.vlgmr.msra.gmra.mxu1 %vm946_vm1, %v720_v56  ;;  %3734 = vmatpush3.bf16.xpose.msra.mxu0 %v998_v58 }
 0x160   : > { %3741 = vmatprep.mubr.msk.bf16.mxu1 %vm4634_vm0, %v4633_v27  ;;  %3745 = vmatprep.subr.bf16.mxu0 %v4633_v27 }
 0x162   : > { %4083 = vrot.lane.b32.xlu0 %v4082_v59, %s4635_s9  ;;  %4098 = vrot.lane.b32.xlu1 %v4862_v45, %s4637_s12 }
 0x166   : > { %3736 = vmatmul.mubr.msk.bf16.vlgmr.msra.gmra.mxu0 %vm946_vm1, %v721_v60  ;;  %4088 = vrot.lane.b32.xlu0 %v4858_v43, %s4636_s11 }
 0x167   : > { %4113 = vrot.lane.b32.xlu1 %v4067_v54, %s4637_s12  ;;  %3747 = vmatprep.mubr.msk.bf16.mxu0 %vm4634_vm0, %v4633_v27 }
 0x16a   : > { %4103 = vrot.lane.b32.xlu0 %v4082_v59, %s4636_s11 }
 0x16b   : > { %4118 = vrot.lane.b32.xlu1 %v4862_v45, %s4638_s14 }
 0x16e   : > { %4108 = vrot.lane.b32.xlu0 %v4858_v43, %s4637_s12 }
 0x16f   : > { %4133 = vrot.lane.b32.xlu1 %v4067_v54, %s4638_s14 }
 0x172   : > { %4123 = vrot.lane.b32.xlu0 %v4082_v59, %s4637_s12 }
 0x173   : > { %4138 = vrot.lane.b32.xlu1 %v4862_v45, %s4639_s10 }
 0x176   : > { %4128 = vrot.lane.b32.xlu0 %v4858_v43, %s4638_s14 }
 0x177   : > { %4153 = vrot.lane.b32.xlu1 %v4067_v54, %s4639_s10 }
 0x17a   : > { %4143 = vrot.lane.b32.xlu0 %v4082_v59, %s4638_s14 }
 0x17b   : > { %4158 = vrot.lane.b32.xlu1 %v4862_v45, %s4640_s8 }
 0x17e   : > { %4148 = vrot.lane.b32.xlu0 %v4858_v43, %s4639_s10 }
 0x17f   : > { %4173 = vrot.lane.b32.xlu1 %v4067_v54, %s4640_s8 }
 0x182   : > { %4163 = vrot.lane.b32.xlu0 %v4082_v59, %s4639_s10 }
 0x183   : > { %4178 = vrot.lane.b32.xlu1 %v4862_v45, %s4641_s20 }
 0x186   : > { %4168 = vrot.lane.b32.xlu0 %v4858_v43, %s4640_s8 }
 0x187   : > { %4188 = vrot.lane.b32.xlu1 %v4067_v54, %s4641_s20 }
 0x18a   : > { %4183 = vrot.lane.b32.xlu0 %v4082_v59, %s4640_s8 }
 0x18b   : > { %4198 = vrot.lane.b32.xlu1 %v4082_v59, %s4641_s20 }
 0x18e   : > { %4193 = vrot.lane.b32.xlu0 %v4858_v43, %s4641_s20 }
 0x18f   : > { %4203 = vrot.lane.b32.xlu1 %v4924_v10, %s4635_s9 }
 0x192   : > { %4208 = vrot.lane.b32.xlu0 %v4920_v9, %s4635_s9  ;;  %s3608_s9 = sshll.u32 %s4701_s25, 9  ;;  %s4548_s25 = scalar_lea.vmem %s5547_s29, 512 }
 0x193   : > { %4213 = vrot.lane.b32.xlu1 %v4924_v10, %s4636_s11  ;;  %p4549_p0 = scmp.ne.s32.totalorder %s5547_s29, %s4548_s25 }
 0x195   : > { %p4550_p10 = pnand %p4549_p0, %p5623_p5 }
 0x196   : > { %4223 = vrot.lane.b32.xlu0 %v4924_v10, %s4637_s12 }
 0x197   : > { %4218 = vrot.lane.b32.xlu1 %v4920_v9, %s4636_s11  ;;  %p4551_p1 = pneg %p4550_p10 }
 0x19b   : > { %4228 = vrot.lane.b32.xlu1 %v4920_v9, %s4637_s12 }
 0x1c6   : > { %v4074_v11 = vpop.permute.xlu1 %4073 }
 0x1c7   : > { %v4076_v20 = vunpack.i.h.bf16 %v4074_v11  ;;  %v4075_v21 = vunpack.i.l.bf16 %v4074_v11 }
 0x1c8   : > { %v4064_v12 = vpop.permute.xlu0 %4063 }
 0x1c9   : > { %v4066_v13 = vunpack.i.h.bf16 %v4064_v12  ;;  %v4065_v14 = vunpack.i.l.bf16 %v4064_v12  ;;  %v722_v28 = vpack.c.bf16 %v4076_v20, %v4075_v21 }
 0x1ca   : > { %v4079_v15 = vpop.permute.xlu1 %4078 }
 0x1cb   : > { %v826_v16 = vpack.c.bf16 %v4066_v13, %v4065_v14  ;;  %v4081_v17 = vunpack.i.h.bf16 %v4079_v15  ;;  %v4080_v18 = vunpack.i.l.bf16 %v4079_v15 }
 0x1cd   : > { %v1045_v19 = vsel %vm946_vm1, %v826_v16, 0  ;;  %v828_v26 = vpack.c.bf16 %v4081_v17, %v4080_v18 }
 0x1ce   : > { %3740 = vmatpush3.bf16.xpose.msra.mxu1 %v1045_v19 }
 0x1cf   : > { %3751 = vmatprep.subr.bf16.mxu1 %v4633_v27  ;;  %v1139_v34 = vsel %vm946_vm1, %v828_v26, 0 }
 0x1d0   : > { %v4069_v22 = vpop.permute.xlu0 %4068  ;;  %v4094_v23 = vpop.permute.xlu1 %4093 }
 0x1d1   : > { %v4071_v24 = vunpack.i.h.bf16 %v4069_v22  ;;  %v4070_v25 = vunpack.i.l.bf16 %v4069_v22  ;;  %v4096_v35 = vunpack.i.h.bf16 %v4094_v23  ;;  %v4095_v36 = vunpack.i.l.bf16 %v4094_v23 }
 0x1d3   : > { %v827_v29 = vpack.c.bf16 %v4071_v24, %v4070_v25  ;;  %v829_v45 = vpack.c.bf16 %v4096_v35, %v4095_v36 }
 0x1d4   : > { %v4084_v30 = vpop.permute.xlu0 %4083  ;;  %v4099_v31 = vpop.permute.xlu1 %4098 }
 0x1d5   : > { %v4101_v32 = vunpack.i.h.bf16 %v4099_v31  ;;  %v4100_v33 = vunpack.i.l.bf16 %v4099_v31  ;;  %3742 = vmatmul.mubr.msk.bf16.vlgmr.msra.gmra.mxu1 %vm946_vm1, %v722_v28  ;;  %v1092_v37 = vsel %vm946_vm1, %v827_v29, 0  ;;  %v4086_v38 = vunpack.i.h.bf16 %v4084_v30 }
 0x1d6   : > { %3752 = vmatpush3.bf16.xpose.msra.mxu1 %v1139_v34  ;;  %3753 = vmatprep.mubr.msk.bf16.mxu1 %vm4634_vm0, %v4633_v27  ;;  %v4085_v39 = vunpack.i.l.bf16 %v4084_v30  ;;  %v1186_v55 = vsel %vm946_vm1, %v829_v45, 0 }
 0x1d7   : > { %3746 = vmatpush3.bf16.xpose.msra.mxu0 %v1092_v37  ;;  %3763 = vmatprep.subr.bf16.mxu1 %v4633_v27  ;;  %v830_v44 = vpack.c.bf16 %v4101_v32, %v4100_v33 }
 0x1d8   : > { %v4089_v40 = vpop.permute.xlu0 %4088  ;;  %3757 = vmatprep.subr.bf16.mxu0 %v4633_v27  ;;  %v723_v47 = vpack.c.bf16 %v4086_v38, %v4085_v39 }
 0x1d9   : > { %v4091_v41 = vunpack.i.h.bf16 %v4089_v40  ;;  %v4090_v42 = vunpack.i.l.bf16 %v4089_v40  ;;  %v4114_v43 = vpop.permute.xlu1 %4113  ;;  %v1233_v52 = vsel %vm946_vm1, %v830_v44, 0 }
 0x1da   : > { %v4116_v49 = vunpack.i.h.bf16 %v4114_v43  ;;  %v4115_v50 = vunpack.i.l.bf16 %v4114_v43 }
 0x1db   : > { %v724_v46 = vpack.c.bf16 %v4091_v41, %v4090_v42 }
 0x1dc   : > { %v4104_v48 = vpop.permute.xlu0 %4103  ;;  %v831_v59 = vpack.c.bf16 %v4116_v49, %v4115_v50 }
 0x1dd   : > { %v4119_v51 = vpop.permute.xlu1 %4118  ;;  %3754 = vmatmul.mubr.msk.bf16.vlgmr.msra.gmra.mxu1 %vm946_vm1, %v724_v46  ;;  %v4106_v56 = vunpack.i.h.bf16 %v4104_v48  ;;  %v4105_v57 = vunpack.i.l.bf16 %v4104_v48 }
 0x1de   : > { %v4121_v53 = vunpack.i.h.bf16 %v4119_v51  ;;  %v4120_v54 = vunpack.i.l.bf16 %v4119_v51  ;;  %3748 = vmatmul.mubr.msk.bf16.vlgmr.msra.gmra.mxu0 %vm946_vm1, %v723_v47  ;;  %3764 = vmatpush3.bf16.xpose.msra.mxu1 %v1233_v52  ;;  %v1280_v12 = vsel %vm946_vm1, %v831_v59, 0 }
 0x1df   : > { %3758 = vmatpush3.bf16.xpose.msra.mxu0 %v1186_v55  ;;  %3759 = vmatprep.mubr.msk.bf16.mxu0 %vm4634_vm0, %v4633_v27  ;;  %v725_v1 = vpack.c.bf16 %v4106_v56, %v4105_v57 }
 0x1e0   : > { %v4109_v58 = vpop.permute.xlu0 %4108  ;;  %3765 = vmatprep.mubr.msk.bf16.mxu1 %vm4634_vm0, %v4633_v27  ;;  %3769 = vmatprep.subr.bf16.mxu0 %v4633_v27  ;;  %v832_v60 = vpack.c.bf16 %v4121_v53, %v4120_v54 }
 0x1e1   : > { %v4111_v61 = vunpack.i.h.bf16 %v4109_v58  ;;  %v4110_v62 = vunpack.i.l.bf16 %v4109_v58  ;;  %v4134_v63 = vpop.permute.xlu1 %4133  ;;  %3775 = vmatprep.subr.bf16.mxu1 %v4633_v27 }
 0x1e2   : > { %v1327_v13 = vsel %vm946_vm1, %v832_v60, 0  ;;  %v4136_v14 = vunpack.i.h.bf16 %v4134_v63  ;;  %v4135_v15 = vunpack.i.l.bf16 %v4134_v63 }
 0x1e3   : > { %v726_v0 = vpack.c.bf16 %v4111_v61, %v4110_v62 }
 0x1e4   : > { %v4124_v2 = vpop.permute.xlu0 %4123  ;;  %v833_v25 = vpack.c.bf16 %v4136_v14, %v4135_v15 }
 0x1e5   : > { %v4139_v11 = vpop.permute.xlu1 %4138  ;;  %3766 = vmatmul.mubr.msk.bf16.vlgmr.msra.gmra.mxu1 %vm946_vm1, %v726_v0  ;;  %v4126_v18 = vunpack.i.h.bf16 %v4124_v2  ;;  %v4125_v19 = vunpack.i.l.bf16 %v4124_v2 }
 0x1e6   : > { %v4141_v16 = vunpack.i.h.bf16 %v4139_v11  ;;  %v4140_v17 = vunpack.i.l.bf16 %v4139_v11  ;;  %3760 = vmatmul.mubr.msk.bf16.vlgmr.msra.gmra.mxu0 %vm946_vm1, %v725_v1  ;;  %3776 = vmatpush3.bf16.xpose.msra.mxu1 %v1327_v13  ;;  %v1374_v36 = vsel %vm946_vm1, %v833_v25, 0 }
 0x1e7   : > { %3770 = vmatpush3.bf16.xpose.msra.mxu0 %v1280_v12  ;;  %3771 = vmatprep.mubr.msk.bf16.mxu0 %vm4634_vm0, %v4633_v27  ;;  %v727_v28 = vpack.c.bf16 %v4126_v18, %v4125_v19 }
 0x1e8   : > { %v4129_v20 = vpop.permute.xlu0 %4128  ;;  %3777 = vmatprep.mubr.msk.bf16.mxu1 %vm4634_vm0, %v4633_v27  ;;  %3781 = vmatprep.subr.bf16.mxu0 %v4633_v27  ;;  %v834_v21 = vpack.c.bf16 %v4141_v16, %v4140_v17 }
 0x1e9   : > { %v4131_v22 = vunpack.i.h.bf16 %v4129_v20  ;;  %v4130_v23 = vunpack.i.l.bf16 %v4129_v20  ;;  %v4154_v24 = vpop.permute.xlu1 %4153  ;;  %3787 = vmatprep.subr.bf16.mxu1 %v4633_v27 }
 0x1ea   : > { %v4156_v30 = vunpack.i.h.bf16 %v4154_v24  ;;  %v4155_v31 = vunpack.i.l.bf16 %v4154_v24  ;;  %v1421_v33 = vsel %vm946_vm1, %v834_v21, 0 }
 0x1eb   : > { %v728_v26 = vpack.c.bf16 %v4131_v22, %v4130_v23 }
 0x1ec   : > { %v4144_v29 = vpop.permute.xlu0 %4143  ;;  %v835_v40 = vpack.c.bf16 %v4156_v30, %v4155_v31 }
 0x1ed   : > { %v4159_v32 = vpop.permute.xlu1 %4158  ;;  %3778 = vmatmul.mubr.msk.bf16.vlgmr.msra.gmra.mxu1 %vm946_vm1, %v728_v26  ;;  %v4146_v37 = vunpack.i.h.bf16 %v4144_v29  ;;  %v4145_v38 = vunpack.i.l.bf16 %v4144_v29 }
 0x1ee   : > { %v4161_v34 = vunpack.i.h.bf16 %v4159_v32  ;;  %v4160_v35 = vunpack.i.l.bf16 %v4159_v32  ;;  %3772 = vmatmul.mubr.msk.bf16.vlgmr.msra.gmra.mxu0 %vm946_vm1, %v727_v28  ;;  %3788 = vmatpush3.bf16.xpose.msra.mxu1 %v1421_v33  ;;  %v1468_v49 = vsel %vm946_vm1, %v835_v40, 0 }
 0x1ef   : > { %3782 = vmatpush3.bf16.xpose.msra.mxu0 %v1374_v36  ;;  %3783 = vmatprep.mubr.msk.bf16.mxu0 %vm4634_vm0, %v4633_v27  ;;  %v729_v46 = vpack.c.bf16 %v4146_v37, %v4145_v38 }
 0x1f0   : > { %v4149_v39 = vpop.permute.xlu0 %4148  ;;  %3789 = vmatprep.mubr.msk.bf16.mxu1 %vm4634_vm0, %v4633_v27  ;;  %3793 = vmatprep.subr.bf16.mxu0 %v4633_v27  ;;  %v836_v41 = vpack.c.bf16 %v4161_v34, %v4160_v35  ;;  %v5046_v35 = vld [vmem:[%s333_s26 + $0x1] ss:$0 sm:$0xff] }
 0x1f1   : > { %v4151_v42 = vunpack.i.h.bf16 %v4149_v39  ;;  %v4150_v43 = vunpack.i.l.bf16 %v4149_v39  ;;  %v4174_v44 = vpop.permute.xlu1 %4173  ;;  %3799 = vmatprep.subr.bf16.mxu1 %v4633_v27 }
 0x1f2   : > { %v1515_v50 = vsel %vm946_vm1, %v836_v41, 0  ;;  %v4176_v51 = vunpack.i.h.bf16 %v4174_v44  ;;  %v4175_v52 = vunpack.i.l.bf16 %v4174_v44 }
 0x1f3   : > { %v730_v45 = vpack.c.bf16 %v4151_v42, %v4150_v43 }
 0x1f4   : > { %v4164_v47 = vpop.permute.xlu0 %4163  ;;  %v837_v61 = vpack.c.bf16 %v4176_v51, %v4175_v52 }
 0x1f5   : > { %v4179_v48 = vpop.permute.xlu1 %4178  ;;  %3790 = vmatmul.mubr.msk.bf16.vlgmr.msra.gmra.mxu1 %vm946_vm1, %v730_v45  ;;  %v4166_v55 = vunpack.i.h.bf16 %v4164_v47  ;;  %v4165_v56 = vunpack.i.l.bf16 %v4164_v47 }
 0x1f6   : > { %v4181_v53 = vunpack.i.h.bf16 %v4179_v48  ;;  %v4180_v54 = vunpack.i.l.bf16 %v4179_v48  ;;  %3784 = vmatmul.mubr.msk.bf16.vlgmr.msra.gmra.mxu0 %vm946_vm1, %v729_v46  ;;  %3800 = vmatpush3.bf16.xpose.msra.mxu1 %v1515_v50  ;;  %v1562_v13 = vsel %vm946_vm1, %v837_v61, 0 }
 0x1f7   : > { %3794 = vmatpush3.bf16.xpose.msra.mxu0 %v1468_v49  ;;  %3795 = vmatprep.mubr.msk.bf16.mxu0 %vm4634_vm0, %v4633_v27  ;;  %v731_v0 = vpack.c.bf16 %v4166_v55, %v4165_v56 }
 0x1f8   : > { %v4169_v57 = vpop.permute.xlu0 %4168  ;;  %3801 = vmatprep.mubr.msk.bf16.mxu1 %vm4634_vm0, %v4633_v27  ;;  %3805 = vmatprep.subr.bf16.mxu0 %v4633_v27  ;;  %v838_v58 = vpack.c.bf16 %v4181_v53, %v4180_v54 }
 0x1f9   : > { %v4171_v59 = vunpack.i.h.bf16 %v4169_v57  ;;  %v4170_v60 = vunpack.i.l.bf16 %v4169_v57  ;;  %3811 = vmatprep.subr.bf16.mxu1 %v4633_v27  ;;  %v4189_v63 = vpop.permute.xlu1 %4188 }
 0x1fa   : > { %v1609_v2 = vsel %vm946_vm1, %v838_v58, 0  ;;  %v4191_v11 = vunpack.i.h.bf16 %v4189_v63  ;;  %v4190_v12 = vunpack.i.l.bf16 %v4189_v63 }
 0x1fb   : > { %v732_v62 = vpack.c.bf16 %v4171_v59, %v4170_v60 }
 0x1fc   : > { %v4184_v1 = vpop.permute.xlu0 %4183  ;;  %v839_v19 = vpack.c.bf16 %v4191_v11, %v4190_v12 }
 0x1fd   : > { %3802 = vmatmul.mubr.msk.bf16.vlgmr.msra.gmra.mxu1 %vm946_vm1, %v732_v62  ;;  %v4186_v14 = vunpack.i.h.bf16 %v4184_v1  ;;  %v4185_v15 = vunpack.i.l.bf16 %v4184_v1  ;;  %v4199_v22 = vpop.permute.xlu1 %4198 }
 0x1fe   : > { %3796 = vmatmul.mubr.msk.bf16.vlgmr.msra.gmra.mxu0 %vm946_vm1, %v731_v0  ;;  %3812 = vmatpush3.bf16.xpose.msra.mxu1 %v1609_v2  ;;  %v1656_v23 = vsel %vm946_vm1, %v839_v19, 0  ;;  %v4201_v24 = vunpack.i.h.bf16 %v4199_v22  ;;  %v4200_v25 = vunpack.i.l.bf16 %v4199_v22 }
 0x1ff   : > { %3806 = vmatpush3.bf16.xpose.msra.mxu0 %v1562_v13  ;;  %3807 = vmatprep.mubr.msk.bf16.mxu0 %vm4634_vm0, %v4633_v27  ;;  %v733_v21 = vpack.c.bf16 %v4186_v14, %v4185_v15 }
 0x200   : > { %v4194_v16 = vpop.permute.xlu0 %4193  ;;  %3813 = vmatprep.mubr.msk.bf16.mxu1 %vm4634_vm0, %v4633_v27  ;;  %3817 = vmatprep.subr.bf16.mxu0 %v4633_v27  ;;  %v735_v26 = vpack.c.bf16 %v4201_v24, %v4200_v25 }
 0x201   : > { %v4196_v17 = vunpack.i.h.bf16 %v4194_v16  ;;  %v4195_v18 = vunpack.i.l.bf16 %v4194_v16  ;;  %3823 = vmatprep.subr.bf16.mxu1 %v4633_v27  ;;  %v5069_v54 = vpop.permute.xlu1 %4203 }
 0x203   : > { %v734_v20 = vpack.c.bf16 %v4196_v17, %v4195_v18 }
 0x204   : > { %v5090_v17 = vpop.permute.xlu0 %4208 }
 0x205   : > { %3814 = vmatmul.mubr.msk.bf16.vlgmr.msra.gmra.mxu1 %vm946_vm1, %v734_v20  ;;  %v5081_v1 = vpop.permute.xlu1 %4213 }
 0x206   : > { %3808 = vmatmul.mubr.msk.bf16.vlgmr.msra.gmra.mxu0 %vm946_vm1, %v733_v21  ;;  %3824 = vmatpush3.bf16.msra.mxu1 %v928_v7  ;;  %v5032_v7 = vld [vmem:[%s333_s26] ss:$0 sm:$0xff] }
 0x207   : > { %3818 = vmatpush3.bf16.xpose.msra.mxu0 %v1656_v23  ;;  %3819 = vmatprep.mubr.msk.bf16.mxu0 %vm4634_vm0, %v4633_v27 }
 0x208   : > { %3829 = vmatprep.subr.bf16.mxu0 %v4633_v27  ;;  %3825 = vmatprep.mubr.msk.bf16.mxu1 %vm4634_vm0, %v4633_v27 }
 0x209   : > { %3835 = vmatprep.subr.bf16.mxu1 %v4633_v27 }
 0x20e   : > { %3820 = vmatmul.mubr.msk.bf16.vlgmr.msra.gmra.mxu0 %vm946_vm1, %v735_v26 }
 0x20f   : > { %3830 = vmatpush3.bf16.msra.mxu0 %v929_v8  ;;  %3831 = vmatprep.mubr.msk.bf16.mxu0 %vm4634_vm0, %v4633_v27  ;;  %v5035_v8 = vld [vmem:[#allocation8 + $0x8] sm:$0xff] }
 0x210   : > { %3841 = vmatprep.subr.bf16.mxu0 %v4633_v27 }
 0x21f   : > { %v987_v6 = vpop.f32.mrf.mxu1 }
 0x220   : > { %v988_v3 = vadd.f32 %v987_v6, %v5030_v4  ;;  %v5104_v6 = vpop.permute.xlu1 %4218 }
 0x221   : > { %v3731_v5 = vpop.f32.mrf.mxu1 }
 0x222   : > { %v5038_v28 = vadd.f32 %v5032_v7, %v988_v3 }
 0x223   : > { %v990_v29 = vpop.f32.mrf.mxu1 }
 0x224   : > { %v991_v30 = vadd.f32 %v990_v29, %v5035_v8  ;;  %v1745_v31 = vsel %vm946_vm1, %v5038_v28, -inf }
 0x225   : > { %1746 = vmax.xlane.f32.xlu0 %v1745_v31  ;;  %v3732_v32 = vpop.f32.mrf.mxu1 }
 0x226   : > { %v1034_v33 = vpop.f32.mrf.mxu0  ;;  %v5044_v34 = vadd.f32 %v5032_v7, %v991_v30  ;;  %v5111_v32 = vpop.permute.xlu0 %4223 }
 0x227   : > { %v1035_v36 = vadd.f32 %v1034_v33, %v5030_v4 }
 0x228   : > { %v3737_v37 = vpop.f32.mrf.mxu0  ;;  %v1748_v38 = vsel %vm946_vm1, %v5044_v34, -inf }
 0x229   : > { %1749 = vmax.xlane.f32.xlu1 %v1748_v38  ;;  %v5052_v39 = vadd.f32 %v5046_v35, %v1035_v36 }
 0x22a   : > { %v1037_v40 = vpop.f32.mrf.mxu0 }
 0x22b   : > { %v1038_v41 = vadd.f32 %v1037_v40, %v5035_v8  ;;  %v1751_v42 = vsel %vm946_vm1, %v5052_v39, -inf }
 0x22c   : > { %v3738_v43 = vpop.f32.mrf.mxu0  ;;  %1752 = vmax.xlane.f32.xlu0 %v1751_v42 }
 0x22d   : > { %v5058_v44 = vadd.f32 %v5046_v35, %v1038_v41 }
 0x22f   : > { %v1754_v45 = vsel %vm946_vm1, %v5058_v44, -inf }
 0x230   : > { %1755 = vmax.xlane.f32.xlu0 %v1754_v45  ;;  %v5123_v45 = vpop.permute.xlu1 %4228 }
 0x295   : > { %v1081_v46 = vpop.f32.mrf.mxu1 }
 0x296   : > { %v1082_v47 = vadd.f32 %v1081_v46, %v5030_v4 }
 0x297   : > { %v3743_v48 = vpop.f32.mrf.mxu1 }
 0x298   : > { %v5064_v49 = vadd.f32 %v5032_v7, %v1082_v47 }
 0x299   : > { %v1084_v50 = vpop.f32.mrf.mxu1 }
 0x29a   : > { %v1085_v51 = vadd.f32 %v1084_v50, %v5035_v8  ;;  %v1757_v52 = vsel %vm946_vm1, %v5064_v49, -inf }
 0x29b   : > { %1758 = vmax.xlane.f32.xlu1 %v1757_v52  ;;  %v3744_v53 = vpop.f32.mrf.mxu1 }
 0x29c   : > { %v5072_v55 = vadd.f32 %v5032_v7, %v1085_v51 }
 0x29d   : > { %v1175_v56 = vpop.f32.mrf.mxu1 }
 0x29e   : > { %v1128_v57 = vpop.f32.mrf.mxu0  ;;  %v1760_v58 = vsel %vm946_vm1, %v5072_v55, -inf  ;;  %v1176_v60 = vadd.f32 %v1175_v56, %v5030_v4 }
 0x29f   : > { %v1129_v59 = vadd.f32 %v1128_v57, %v5030_v4  ;;  %1761 = vmax.xlane.f32.xlu0 %v1760_v58  ;;  %v3755_v61 = vpop.f32.mrf.mxu1 }
 0x2a0   : > { %v3749_v62 = vpop.f32.mrf.mxu0  ;;  %v5088_v15 = vadd.f32 %v5032_v7, %v1176_v60 }
 0x2a1   : > { %v1178_v63 = vpop.f32.mrf.mxu1  ;;  %v5079_v0 = vadd.f32 %v5046_v35, %v1129_v59 }
 0x2a2   : > { %v1131_v2 = vpop.f32.mrf.mxu0  ;;  %v1179_v11 = vadd.f32 %v1178_v63, %v5035_v8  ;;  %v1769_v25 = vsel %vm946_vm1, %v5088_v15, -inf }
 0x2a3   : > { %v1132_v12 = vadd.f32 %v1131_v2, %v5035_v8  ;;  %v1763_v13 = vsel %vm946_vm1, %v5079_v0, -inf  ;;  %v3756_v14 = vpop.f32.mrf.mxu1 }
 0x2a4   : > { %v3750_v16 = vpop.f32.mrf.mxu0  ;;  %1764 = vmax.xlane.f32.xlu1 %v1763_v13  ;;  %v5096_v21 = vadd.f32 %v5032_v7, %v1179_v11 }
 0x2a5   : > { %v1269_v18 = vpop.f32.mrf.mxu1  ;;  %v5093_v19 = vadd.f32 %v5046_v35, %v1132_v12 }
 0x2a6   : > { %v1222_v20 = vpop.f32.mrf.mxu0  ;;  %v1270_v23 = vadd.f32 %v1269_v18, %v5030_v4  ;;  %v1772_v31 = vsel %vm946_vm1, %v5096_v21, -inf }
 0x2a7   : > { %v1223_v22 = vadd.f32 %v1222_v20, %v5030_v4  ;;  %v1766_v24 = vsel %vm946_vm1, %v5093_v19, -inf  ;;  %v3767_v26 = vpop.f32.mrf.mxu1 }
 0x2a8   : > { %v3761_v3 = vpop.f32.mrf.mxu0  ;;  %1767 = vmax.xlane.f32.xlu0 %v1766_v24  ;;  %1770 = vmax.xlane.f32.xlu1 %v1769_v25  ;;  %v5118_v40 = vadd.f32 %v5032_v7, %v1270_v23 }
 0x2a9   : > { %v1272_v5 = vpop.f32.mrf.mxu1  ;;  %v5107_v29 = vadd.f32 %v5046_v35, %v1223_v22 }
 0x2aa   : > { %v1225_v30 = vpop.f32.mrf.mxu0  ;;  %v1273_v36 = vadd.f32 %v1272_v5, %v5035_v8  ;;  %v1781_v52 = vsel %vm946_vm1, %v5118_v40, -inf }
 0x2ab   : > { %v1226_v33 = vadd.f32 %v1225_v30, %v5035_v8  ;;  %v1775_v37 = vsel %vm946_vm1, %v5107_v29, -inf  ;;  %v3768_v38 = vpop.f32.mrf.mxu1 }
 0x2ac   : > { %v3762_v41 = vpop.f32.mrf.mxu0  ;;  %1776 = vmax.xlane.f32.xlu1 %v1775_v37  ;;  %1773 = vmax.xlane.f32.xlu0 %v1772_v31  ;;  %v5132_v56 = vadd.f32 %v5032_v7, %v1273_v36 }
 0x2ad   : > { %v1363_v42 = vpop.f32.mrf.mxu1  ;;  %v5121_v43 = vadd.f32 %v5046_v35, %v1226_v33 }
 0x2ae   : > { %v1316_v46 = vpop.f32.mrf.mxu0  ;;  %v1364_v47 = vadd.f32 %v1363_v42, %v5030_v4  ;;  %v1747_v50 = vpop.xlane.xlu0 %1746  ;;  %v1784_v13 = vsel %vm946_vm1, %v5132_v56, -inf }
 0x2af   : > { %v1317_v48 = vadd.f32 %v1316_v46, %v5030_v4  ;;  %v1778_v51 = vsel %vm946_vm1, %v5121_v43, -inf  ;;  %v3779_v53 = vpop.f32.mrf.mxu1  ;;  %v1841_v60 = vsub.f32 %v5038_v28, %v1747_v50 }
 0x2b0   : > { %v3773_v57 = vpop.f32.mrf.mxu0  ;;  %1779 = vmax.xlane.f32.xlu0 %v1778_v51  ;;  %1782 = vmax.xlane.f32.xlu1 %v1781_v52  ;;  %v5139_v62 = vadd.f32 %v5032_v7, %v1364_v47 }
 0x2b1   : > { %v1366_v58 = vpop.f32.mrf.mxu1  ;;  %v5135_v59 = vadd.f32 %v5046_v35, %v1317_v48  ;;  %v1873_v20 = vmul.f32 1.442695, %v1841_v60 }
 0x2b2   : > { %v1319_v61 = vpop.f32.mrf.mxu0  ;;  %v1750_v2 = vpop.xlane.xlu1 %1749  ;;  %v1367_v11 = vadd.f32 %v1366_v58, %v5035_v8  ;;  %v1793_v24 = vsel %vm946_vm1, %v5139_v62, -inf }
 0x2b3   : > { %v1320_v63 = vadd.f32 %v1319_v61, %v5035_v8  ;;  %v1787_v12 = vsel %vm946_vm1, %v5135_v59, -inf  ;;  %v3780_v14 = vpop.f32.mrf.mxu1  ;;  %v1842_v22 = vsub.f32 %v5044_v34, %v1750_v2  ;;  %4314 = vpow2.f32 %v1873_v20 }
 0x2b4   : > { %v3774_v16 = vpop.f32.mrf.mxu0  ;;  %1788 = vmax.xlane.f32.xlu1 %v1787_v12  ;;  %1785 = vmax.xlane.f32.xlu0 %v1784_v13  ;;  %v5158_v30 = vadd.f32 %v5032_v7, %v1367_v11 }
 0x2b5   : > { %v1457_v28 = vpop.f32.mrf.mxu1  ;;  %v5148_v18 = vadd.f32 %v5046_v35, %v1320_v63  ;;  %v1753_v33 = vpop.xlane.xlu0 %1752  ;;  %v1875_v37 = vmul.f32 1.442695, %v1842_v22 }
 0x2b6   : > { %v1410_v23 = vpop.f32.mrf.mxu0  ;;  %v1458_v26 = vadd.f32 %v1457_v28, %v5030_v4  ;;  %v1796_v47 = vsel %vm946_vm1, %v5158_v30, -inf  ;;  %v1843_v57 = vsub.f32 %v5052_v39, %v1753_v33 }
 0x2b7   : > { %v1411_v25 = vadd.f32 %v1410_v23, %v5030_v4  ;;  %v1790_v3 = vsel %vm946_vm1, %v5148_v18, -inf  ;;  %v3791_v5 = vpop.f32.mrf.mxu1  ;;  %4316 = vpow2.f32 %v1875_v37 }
 0x2b8   : > { %v3785_v31 = vpop.f32.mrf.mxu0  ;;  %1791 = vmax.xlane.f32.xlu0 %v1790_v3  ;;  %1794 = vmax.xlane.f32.xlu1 %v1793_v24  ;;  %v5170_v50 = vadd.f32 %v5032_v7, %v1458_v26  ;;  %v1877_v28 = vmul.f32 1.442695, %v1843_v57 }
 0x2b9   : > { %v1460_v34 = vpop.f32.mrf.mxu1  ;;  %v5161_v36 = vadd.f32 %v5046_v35, %v1411_v25  ;;  %v1756_v61 = vpop.xlane.xlu0 %1755 }
 0x2ba   : > { %v1413_v38 = vpop.f32.mrf.mxu0  ;;  %v1461_v41 = vadd.f32 %v1460_v34, %v5035_v8  ;;  %v1805_v12 = vsel %vm946_vm1, %v5170_v50, -inf  ;;  %v1844_v20 = vsub.f32 %v5058_v44, %v1756_v61  ;;  %4318 = vpow2.f32 %v1877_v28 }
 0x2bb   : > { %v1414_v42 = vadd.f32 %v1413_v38, %v5035_v8  ;;  %v1799_v46 = vsel %vm946_vm1, %v5161_v36, -inf  ;;  %v3792_v48 = vpop.f32.mrf.mxu1 }
 0x2bc   : > { %v3786_v51 = vpop.f32.mrf.mxu0  ;;  %1800 = vmax.xlane.f32.xlu1 %v1799_v46  ;;  %1797 = vmax.xlane.f32.xlu0 %v1796_v47  ;;  %v5177_v60 = vadd.f32 %v5032_v7, %v1461_v41  ;;  %v1879_v34 = vmul.f32 1.442695, %v1844_v20 }
 0x2bd   : > { %v1551_v52 = vpop.f32.mrf.mxu1  ;;  %v5173_v53 = vadd.f32 %v5046_v35, %v1414_v42 }
 0x2be   : > { %v1504_v58 = vpop.f32.mrf.mxu0  ;;  %v1552_v2 = vadd.f32 %v1551_v52, %v5030_v4  ;;  %v1808_v23 = vsel %vm946_vm1, %v5177_v60, -inf  ;;  %4320 = vpow2.f32 %v1879_v34 }
 0x2bf   : > { %v1505_v63 = vadd.f32 %v1504_v58, %v5030_v4  ;;  %v1802_v11 = vsel %vm946_vm1, %v5173_v53, -inf  ;;  %v3803_v13 = vpop.f32.mrf.mxu1 }
 0x2c0   : > { %v3797_v14 = vpop.f32.mrf.mxu0  ;;  %1803 = vmax.xlane.f32.xlu0 %v1802_v11  ;;  %1806 = vmax.xlane.f32.xlu1 %v1805_v12  ;;  %v5196_v5 = vadd.f32 %v5032_v7, %v1552_v2  ;;  %v5201_v38 = vpop.eup %4314 }
 0x2c1   : > { %v1554_v39 = vpop.f32.mrf.mxu1  ;;  %v5186_v16 = vadd.f32 %v5046_v35, %v1505_v63  ;;  %v1937_v58 = vsel %vm946_vm1, %v5201_v38, 0.0 }
 0x2c2   : > { %v1507_v22 = vpop.f32.mrf.mxu0  ;;  %v1555_v25 = vadd.f32 %v1554_v39, %v5035_v8  ;;  %v1817_v46 = vsel %vm946_vm1, %v5196_v5, -inf }
 0x2c3   : > { %v1508_v24 = vadd.f32 %v1507_v22, %v5035_v8  ;;  %v1811_v26 = vsel %vm946_vm1, %v5186_v16, -inf  ;;  %v3804_v3 = vpop.f32.mrf.mxu1 }
 0x2c4   : > { %v3798_v31 = vpop.f32.mrf.mxu0  ;;  %1812 = vmax.xlane.f32.xlu1 %v1811_v26  ;;  %1809 = vmax.xlane.f32.xlu0 %v1808_v23  ;;  %v5209_v48 = vadd.f32 %v5032_v7, %v1555_v25  ;;  %v5213_v61 = vpop.eup %4316 }
 0x2c5   : > { %v1645_v33 = vpop.f32.mrf.mxu1  ;;  %v5199_v44 = vadd.f32 %v5046_v35, %v1508_v24  ;;  %v1940_v28 = vsel %vm946_vm1, %v5213_v61, 0.0 }
 0x2c6   : > { %v1598_v37 = vpop.f32.mrf.mxu0  ;;  %v1646_v63 = vadd.f32 %v1645_v33, %v5030_v4  ;;  %v1820_v11 = vsel %vm946_vm1, %v5209_v48, -inf }
 0x2c7   : > { %v1599_v41 = vadd.f32 %v1598_v37, %v5030_v4  ;;  %v1814_v42 = vsel %vm946_vm1, %v5199_v44, -inf  ;;  %v3815_v47 = vpop.f32.mrf.mxu1  ;;  %v5233_v3 = vpop.eup %4318 }
 0x2c8   : > { %v3809_v51 = vpop.f32.mrf.mxu0  ;;  %1815 = vmax.xlane.f32.xlu0 %v1814_v42  ;;  %1818 = vmax.xlane.f32.xlu1 %v1817_v46  ;;  %v5231_v24 = vadd.f32 %v5032_v7, %v1646_v63  ;;  %v1943_v47 = vsel %vm946_vm1, %v5233_v3, 0.0 }
 0x2c9   : > { %v1648_v52 = vpop.f32.mrf.mxu1  ;;  %v5220_v13 = vadd.f32 %v5046_v35, %v1599_v41 }
 0x2ca   : > { %v1601_v57 = vpop.f32.mrf.mxu0  ;;  %v1649_v20 = vadd.f32 %v1648_v52, %v5035_v8  ;;  %v1829_v34 = vsel %vm946_vm1, %v5231_v24, -inf }
 0x2cb   : > { %v1602_v2 = vadd.f32 %v1601_v57, %v5035_v8  ;;  %v3816_v12 = vpop.f32.mrf.mxu1  ;;  %v1823_v22 = vsel %vm946_vm1, %v5220_v13, -inf  ;;  %v5243_v42 = vpop.eup %4320 }
 0x2cc   : > { %v3810_v14 = vpop.f32.mrf.mxu0  ;;  %1938 = vadd.xlane.f32.xlu1 %v1937_v58  ;;  %1821 = vmax.xlane.f32.xlu0 %v1820_v11  ;;  %v5241_v37 = vadd.f32 %v5032_v7, %v1649_v20  ;;  %v1946_v52 = vsel %vm946_vm1, %v5243_v42, 0.0 }
 0x2cd   : > { %v5228_v23 = vadd.f32 %v5046_v35, %v1602_v2 }
 0x2ce   : > { %v1692_v39 = vpop.f32.mrf.mxu0 }
 0x2cf   : > { %v1693_v31 = vadd.f32 %v1692_v39, %v5030_v4  ;;  %v1826_v33 = vsel %vm946_vm1, %v5228_v23, -inf  ;;  %v1832_v4 = vsel %vm946_vm1, %v5241_v37, -inf }
 0x2d0   : > { %v3821_v25 = vpop.f32.mrf.mxu0  ;;  %1824 = vmax.xlane.f32.xlu1 %v1823_v22  ;;  %1941 = vadd.xlane.f32.xlu0 %v1940_v28 }
 0x2d1   : > { %v5251_v51 = vadd.f32 %v5046_v35, %v1693_v31 }
 0x2d2   : > { %v1695_v26 = vpop.f32.mrf.mxu0 }
 0x2d3   : > { %v1696_v46 = vadd.f32 %v1695_v26, %v5035_v8  ;;  %v1835_v7 = vsel %vm946_vm1, %v5251_v51, -inf }
 0x2d4   : > { %v3822_v41 = vpop.f32.mrf.mxu0  ;;  %1827 = vmax.xlane.f32.xlu0 %v1826_v33  ;;  %1830 = vmax.xlane.f32.xlu1 %v1829_v34 }
 0x2d5   : > { %v5258_v57 = vadd.f32 %v5046_v35, %v1696_v46 }
 0x2d7   : > { %v1838_v8 = vsel %vm946_vm1, %v5258_v57, -inf }
 0x2d8   : > { %1944 = vadd.xlane.f32.xlu1 %v1943_v47  ;;  %1833 = vmax.xlane.f32.xlu0 %v1832_v4 }
 0x2dc   : > { %1836 = vmax.xlane.f32.xlu1 %v1835_v7  ;;  %1947 = vadd.xlane.f32.xlu0 %v1946_v52 }
 0x2e0   : > { %1839 = vmax.xlane.f32.xlu0 %v1838_v8 }
 0x2ed   : > { %4238 = vrot.lane.b32.xlu1 %v4920_v9, %s4638_s14 }
 0x2f6   : > { %4233 = vrot.lane.b32.xlu0 %v4924_v10, %s4638_s14  ;;  %s5552_s14 = scalar_lea.hbm %s5601_s6, %s3608_s9 }
 0x324   : > { %v1759_v58 = vpop.xlane.xlu1 %1758 }
 0x325   : > { %v1845_v63 = vsub.f32 %v5064_v49, %v1759_v58 }
 0x327   : > { %v1881_v2 = vmul.f32 1.442695, %v1845_v63 }
 0x328   : > { %v1762_v11 = vpop.xlane.xlu0 %1761 }
 0x329   : > { %4322 = vpow2.f32 %v1881_v2  ;;  %v1846_v35 = vsub.f32 %v5072_v55, %v1762_v11 }
 0x32b   : > { %v1883_v12 = vmul.f32 1.442695, %v1846_v35 }
 0x32d   : > { %4324 = vpow2.f32 %v1883_v12  ;;  %v1765_v14 = vpop.xlane.xlu1 %1764 }
 0x32e   : > { %v1847_v39 = vsub.f32 %v5079_v0, %v1765_v14 }
 0x330   : > { %v1885_v28 = vmul.f32 1.442695, %v1847_v39 }
 0x331   : > { %v1768_v20 = vpop.xlane.xlu0 %1767  ;;  %v1771_v22 = vpop.xlane.xlu1 %1770 }
 0x332   : > { %4326 = vpow2.f32 %v1885_v28  ;;  %v1848_v25 = vsub.f32 %v5093_v19, %v1768_v20  ;;  %v1849_v26 = vsub.f32 %v5088_v15, %v1771_v22 }
 0x334   : > { %v1887_v31 = vmul.f32 1.442695, %v1848_v25  ;;  %v1889_v49 = vmul.f32 1.442695, %v1849_v26 }
 0x335   : > { %v1777_v33 = vpop.xlane.xlu1 %1776  ;;  %v1774_v34 = vpop.xlane.xlu0 %1773 }
 0x336   : > { %v5271_v41 = vpop.eup %4322  ;;  %4328 = vpow2.f32 %v1887_v31  ;;  %v1851_v55 = vsub.f32 %v5107_v29, %v1777_v33  ;;  %v1850_v46 = vsub.f32 %v5096_v21, %v1774_v34 }
 0x337   : > { %4330 = vpow2.f32 %v1889_v49  ;;  %v1949_v0 = vsel %vm946_vm1, %v5271_v41, 0.0 }
 0x338   : > { %v1893_v47 = vmul.f32 1.442695, %v1851_v55  ;;  %v1891_v4 = vmul.f32 1.442695, %v1850_v46  ;;  %1950 = vadd.xlane.f32.xlu1 %v1949_v0 }
 0x339   : > { %v1780_v19 = vpop.xlane.xlu0 %1779  ;;  %v1783_v15 = vpop.xlane.xlu1 %1782 }
 0x33a   : > { %v5277_v7 = vpop.eup %4324  ;;  %4332 = vpow2.f32 %v1893_v47  ;;  %v1852_v52 = vsub.f32 %v5121_v43, %v1780_v19  ;;  %v1853_v8 = vsub.f32 %v5118_v40, %v1783_v15 }
 0x33b   : > { %4334 = vpow2.f32 %v1891_v4  ;;  %v1952_v21 = vsel %vm946_vm1, %v5277_v7, 0.0 }
 0x33c   : > { %v1895_v29 = vmul.f32 1.442695, %v1852_v52  ;;  %v1897_v58 = vmul.f32 1.442695, %v1853_v8  ;;  %1953 = vadd.xlane.f32.xlu0 %v1952_v21 }
 0x33d   : > { %v1789_v63 = vpop.xlane.xlu1 %1788  ;;  %v1786_v2 = vpop.xlane.xlu0 %1785 }
 0x33e   : > { %4336 = vpow2.f32 %v1895_v29  ;;  %v1855_v11 = vsub.f32 %v5135_v59, %v1789_v63  ;;  %v1854_v35 = vsub.f32 %v5132_v56, %v1786_v2 }
 0x33f   : > { %v5285_v12 = vpop.eup %4326  ;;  %4338 = vpow2.f32 %v1897_v58 }
 0x340   : > { %v1901_v43 = vmul.f32 1.442695, %v1855_v11  ;;  %v1899_v14 = vmul.f32 1.442695, %v1854_v35  ;;  %v1955_v40 = vsel %vm946_vm1, %v5285_v12, 0.0 }
 0x341   : > { %v1792_v39 = vpop.xlane.xlu0 %1791  ;;  %v1795_v28 = vpop.xlane.xlu1 %1794  ;;  %1956 = vadd.xlane.f32.xlu1 %v1955_v40 }
 0x342   : > { %4340 = vpow2.f32 %v1901_v43  ;;  %v1856_v20 = vsub.f32 %v5148_v18, %v1792_v39  ;;  %v1857_v22 = vsub.f32 %v5139_v62, %v1795_v28 }
 0x343   : > { %v5291_v25 = vpop.eup %4328  ;;  %4342 = vpow2.f32 %v1899_v14 }
 0x344   : > { %v5293_v56 = vpop.eup %4330  ;;  %v1903_v59 = vmul.f32 1.442695, %v1856_v20  ;;  %v1905_v26 = vmul.f32 1.442695, %v1857_v22  ;;  %v1958_v31 = vsel %vm946_vm1, %v5291_v25, 0.0 }
 0x345   : > { %v1801_v49 = vpop.xlane.xlu1 %1800  ;;  %v1798_v33 = vpop.xlane.xlu0 %1797  ;;  %v1961_v34 = vsel %vm946_vm1, %v5293_v56, 0.0  ;;  %1959 = vadd.xlane.f32.xlu0 %v1958_v31 }
 0x346   : > { %4344 = vpow2.f32 %v1903_v59  ;;  %v1859_v18 = vsub.f32 %v5161_v36, %v1801_v49  ;;  %v1858_v62 = vsub.f32 %v5158_v30, %v1798_v33  ;;  %1962 = vadd.xlane.f32.xlu1 %v1961_v34 }
 0x347   : > { %v5301_v55 = vpop.eup %4332  ;;  %4346 = vpow2.f32 %v1905_v26 }
 0x348   : > { %v5303_v46 = vpop.eup %4334  ;;  %v1907_v0 = vmul.f32 1.442695, %v1858_v62  ;;  %v1967_v47 = vsel %vm946_vm1, %v5301_v55, 0.0  ;;  %v1909_v4 = vmul.f32 1.442695, %v1859_v18 }
 0x349   : > { %v1804_v19 = vpop.xlane.xlu0 %1803  ;;  %v1807_v15 = vpop.xlane.xlu1 %1806  ;;  %v1964_v52 = vsel %vm946_vm1, %v5303_v46, 0.0 }
 0x34a   : > { %v1860_v36 = vsub.f32 %v5173_v53, %v1804_v19  ;;  %v1861_v30 = vsub.f32 %v5170_v50, %v1807_v15  ;;  %1968 = vadd.xlane.f32.xlu1 %v1967_v47  ;;  %1965 = vadd.xlane.f32.xlu0 %v1964_v52  ;;  %4348 = vpow2.f32 %v1907_v0 }
 0x34b   : > { %v5311_v8 = vpop.eup %4336  ;;  %4350 = vpow2.f32 %v1909_v4 }
 0x34c   : > { %v5313_v21 = vpop.eup %4338  ;;  %v1913_v29 = vmul.f32 1.442695, %v1861_v30  ;;  %v1970_v58 = vsel %vm946_vm1, %v5311_v8, 0.0  ;;  %v1911_v63 = vmul.f32 1.442695, %v1860_v36 }
 0x34d   : > { %v1813_v2 = vpop.xlane.xlu1 %1812  ;;  %v1810_v11 = vpop.xlane.xlu0 %1809  ;;  %v1973_v53 = vsel %vm946_vm1, %v5313_v21, 0.0 }
 0x34e   : > { %v1862_v50 = vsub.f32 %v5177_v60, %v1810_v11  ;;  %1974 = vadd.xlane.f32.xlu1 %v1973_v53  ;;  %1971 = vadd.xlane.f32.xlu0 %v1970_v58  ;;  %4352 = vpow2.f32 %v1913_v29  ;;  %v1863_v14 = vsub.f32 %v5186_v16, %v1813_v2 }
 0x34f   : > { %v5320_v35 = vpop.eup %4340  ;;  %4354 = vpow2.f32 %v1911_v63 }
 0x350   : > { %v5322_v43 = vpop.eup %4342  ;;  %v1979_v40 = vsel %vm946_vm1, %v5320_v35, 0.0  ;;  %v1915_v39 = vmul.f32 1.442695, %v1862_v50  ;;  %v1917_v26 = vmul.f32 1.442695, %v1863_v14 }
 0x351   : > { %v1816_v28 = vpop.xlane.xlu0 %1815  ;;  %v1819_v20 = vpop.xlane.xlu1 %1818  ;;  %v1976_v22 = vsel %vm946_vm1, %v5322_v43, 0.0 }
 0x352   : > { %1980 = vadd.xlane.f32.xlu1 %v1979_v40  ;;  %1977 = vadd.xlane.f32.xlu0 %v1976_v22  ;;  %4356 = vpow2.f32 %v1915_v39  ;;  %v1865_v31 = vsub.f32 %v5196_v5, %v1819_v20  ;;  %v1864_v47 = vsub.f32 %v5199_v44, %v1816_v28 }
 0x353   : > { %v5329_v60 = vpop.eup %4344  ;;  %4358 = vpow2.f32 %v1917_v26 }
 0x354   : > { %v5331_v59 = vpop.eup %4346  ;;  %v1982_v16 = vsel %vm946_vm1, %v5329_v60, 0.0  ;;  %v1921_v4 = vmul.f32 1.442695, %v1865_v31  ;;  %v1919_v30 = vmul.f32 1.442695, %v1864_v47 }
 0x355   : > { %v1939_v49 = vpop.xlane.xlu1 %1938  ;;  %v1822_v33 = vpop.xlane.xlu0 %1821  ;;  %v1985_v34 = vsel %vm946_vm1, %v5331_v59, 0.0 }
 0x356   : > { %v1866_v18 = vsub.f32 %v5209_v48, %v1822_v33  ;;  %1986 = vadd.xlane.f32.xlu1 %v1985_v34  ;;  %1983 = vadd.xlane.f32.xlu0 %v1982_v16  ;;  %4360 = vrcp.f32 %v1939_v49 }
 0x357   : > { %v5339_v62 = vpop.eup %4348 }
 0x358   : > { %v1923_v0 = vmul.f32 1.442695, %v1866_v18  ;;  %v1988_v5 = vsel %vm946_vm1, %v5339_v62, 0.0  ;;  %v5344_v52 = vpop.eup %4350  ;;  %v4206_v18 = vunpack.i.h.bf16 %v5069_v54 }
 0x359   : > { %v1825_v19 = vpop.xlane.xlu1 %1824  ;;  %v1942_v15 = vpop.xlane.xlu0 %1941  ;;  %v1991_v63 = vsel %vm946_vm1, %v5344_v52, 0.0 }
 0x35a   : > { %4362 = vpow2.f32 %v1923_v0  ;;  %1989 = vadd.xlane.f32.xlu0 %v1988_v5  ;;  %v1867_v36 = vsub.f32 %v5220_v13, %v1825_v19  ;;  %v4205_v0 = vunpack.i.l.bf16 %v5069_v54 }
 0x35b   : > { %4364 = vrcp.f32 %v1942_v15  ;;  %v5346_v48 = vpop.eup %4352 }
 0x35c   : > { %4366 = vpow2.f32 %v1921_v4  ;;  %v1997_v44 = vsel %vm946_vm1, %v5346_v48, 0.0  ;;  %v5353_v2 = vpop.eup %4354  ;;  %v1925_v53 = vmul.f32 1.442695, %v1867_v36 }
 0x35d   : > { %v1828_v29 = vpop.xlane.xlu0 %1827  ;;  %v1831_v58 = vpop.xlane.xlu1 %1830  ;;  %1998 = vadd.xlane.f32.xlu1 %v1997_v44  ;;  %4368 = vpow2.f32 %v1919_v30  ;;  %v1994_v40 = vsel %vm946_vm1, %v5353_v2, 0.0  ;;  %v930_v30 = vpack.c.bf16 %v4206_v18, %v4205_v0 }
 0x35e   : > { %v1868_v11 = vsub.f32 %v5228_v23, %v1828_v29  ;;  %1992 = vadd.xlane.f32.xlu0 %v1991_v63  ;;  %v1869_v13 = vsub.f32 %v5231_v24, %v1831_v58 }
 0x35f   : > { %v5359_v28 = vpop.eup %4356 }
 0x360   : > { %v1927_v50 = vmul.f32 1.442695, %v1868_v11  ;;  %v5362_v22 = vpop.eup %4358  ;;  %v1929_v26 = vmul.f32 1.442695, %v1869_v13  ;;  %v2000_v24 = vsel %vm946_vm1, %v5359_v28, 0.0  ;;  %v4210_v13 = vunpack.i.l.bf16 %v5090_v17 }
 0x361   : > { %v1945_v14 = vpop.xlane.xlu1 %1944  ;;  %v1834_v39 = vpop.xlane.xlu0 %1833  ;;  %v2003_v4 = vsel %vm946_vm1, %v5362_v22, 0.0 }
 0x362   : > { %4370 = vpow2.f32 %v1927_v50  ;;  %1995 = vadd.xlane.f32.xlu0 %v1994_v40  ;;  %v1870_v20 = vsub.f32 %v5241_v37, %v1834_v39  ;;  %v4211_v50 = vunpack.i.h.bf16 %v5090_v17 }
 0x363   : > { %4372 = vpow2.f32 %v1925_v53  ;;  %v4361_v49 = vpop.eup %4360 }
 0x364   : > { %v1931_v23 = vmul.f32 1.442695, %v1870_v20  ;;  %4374 = vrcp.f32 %v1945_v14 }
 0x365   : > { %v1837_v16 = vpop.xlane.xlu1 %1836  ;;  %v1948_v31 = vpop.xlane.xlu0 %1947 }
 0x366   : > { %4376 = vpow2.f32 %v1931_v23  ;;  %v1871_v33 = vsub.f32 %v5251_v51, %v1837_v16  ;;  %2001 = vadd.xlane.f32.xlu0 %v2000_v24  ;;  %v2065_v51 = vmul.f32 %v4361_v49, %v5201_v38  ;;  %v931_v16 = vpack.c.bf16 %v4211_v50, %v4210_v13 }
 0x367   : > { %v5367_v34 = vpop.eup %4362  ;;  %4378 = vrcp.f32 %v1948_v31 }
 0x368   : > { %v4365_v37 = vpop.eup %4364  ;;  %v2012_v47 = vsel %vm946_vm1, %v5367_v34, 0.0  ;;  %4380 = vpow2.f32 %v1929_v26  ;;  %v1933_v19 = vmul.f32 1.442695, %v1871_v33 }
 0x369   : > { %2013 = vadd.xlane.f32.xlu1 %v2012_v47  ;;  %v2066_v15 = vmul.f32 %v4365_v37, %v5213_v61  ;;  %v5377_v5 = vpop.eup %4366  ;;  %v5432_v18 = vpop.permute.xlu1 %4238 }
 0x36a   : > { %2004 = vadd.xlane.f32.xlu0 %v2003_v4  ;;  %4382 = vpow2.f32 %v1933_v19  ;;  %v2009_v54 = vsel %vm946_vm1, %v5377_v5, 0.0  ;;  %v5382_v29 = vpop.eup %4368 }
 0x36b   : > { %v2097_v36 = vpack.c.bf16 %v2066_v15, %v2065_v51  ;;  %v2006_v58 = vsel %vm946_vm1, %v5382_v29, 0.0 }
 0x36d   : > { %3826 = vmatmul.mubr.msk.bf16.vlgmr.msra.gmra.mxu1 %vm946_vm1, %v2097_v36  ;;  %v4216_v36 = vunpack.i.h.bf16 %v5081_v1 }
 0x36e   : > { %3836 = vmatpush3.bf16.msra.mxu1 %v930_v30  ;;  %2010 = vadd.xlane.f32.xlu0 %v2009_v54  ;;  %v4215_v30 = vunpack.i.l.bf16 %v5081_v1 }
 0x36f   : > { %v5384_v44 = vpop.eup %4370  ;;  %3837 = vmatprep.mubr.msk.bf16.mxu1 %vm4634_vm0, %v4633_v27  ;;  %3847 = vmatprep.subr.bf16.mxu1 %v4633_v27 }
 0x370   : > { %v2018_v38 = vsel %vm946_vm1, %v5384_v44, 0.0  ;;  %v5391_v61 = vpop.eup %4372 }
 0x371   : > { %2019 = vadd.xlane.f32.xlu1 %v2018_v38  ;;  %v4375_v63 = vpop.eup %4374  ;;  %v2015_v40 = vsel %vm946_vm1, %v5391_v61, 0.0 }
 0x372   : > { %2007 = vadd.xlane.f32.xlu0 %v2006_v58  ;;  %v2067_v39 = vmul.f32 %v4375_v63, %v5233_v3 }
 0x373   : > { %v5395_v11 = vpop.eup %4376 }
 0x374   : > { %v4379_v53 = vpop.eup %4378  ;;  %v2024_v14 = vsel %vm946_vm1, %v5395_v11, 0.0 }
 0x375   : > { %2025 = vadd.xlane.f32.xlu1 %v2024_v14  ;;  %v2068_v20 = vmul.f32 %v4379_v53, %v5243_v42  ;;  %v5405_v23 = vpop.eup %4380  ;;  %v1840_v42 = vpop.xlane.xlu0 %1839  ;;  %v932_v53 = vpack.c.bf16 %v4216_v36, %v4215_v30 }
 0x376   : > { %2016 = vadd.xlane.f32.xlu0 %v2015_v40  ;;  %v2021_v17 = vsel %vm946_vm1, %v5405_v23, 0.0  ;;  %v1872_v31 = vsub.f32 %v5258_v57, %v1840_v42  ;;  %v4221_v40 = vunpack.i.h.bf16 %v5104_v6 }
 0x377   : > { %v2098_v26 = vpack.c.bf16 %v2068_v20, %v2067_v39  ;;  %v5410_v24 = vpop.eup %4382  ;;  %v4220_v39 = vunpack.i.l.bf16 %v5104_v6 }
 0x378   : > { %v2027_v3 = vsel %vm946_vm1, %v5410_v24, 0.0  ;;  %v1935_v49 = vmul.f32 1.442695, %v1872_v31 }
 0x379   : > { %3832 = vmatmul.mubr.msk.bf16.vlgmr.msra.gmra.mxu0 %vm946_vm1, %v2098_v26  ;;  %v5434_v0 = vpop.permute.xlu0 %4233  ;;  %v933_v31 = vpack.c.bf16 %v4221_v40, %v4220_v39 }
 0x37a   : > { %3842 = vmatpush3.bf16.msra.mxu0 %v931_v16  ;;  %2022 = vadd.xlane.f32.xlu0 %v2021_v17  ;;  %4384 = vpow2.f32 %v1935_v49 }
 0x37b   : > { %3843 = vmatprep.mubr.msk.bf16.mxu0 %vm4634_vm0, %v4633_v27  ;;  %3853 = vmatprep.subr.bf16.mxu0 %v4633_v27 }
 0x37e   : > { %2028 = vadd.xlane.f32.xlu0 %v2027_v3 }
 0x386   : > { %4248 = vrot.lane.b32.xlu1 %v4920_v9, %s4639_s10 }
 0x387   : > { %v5428_v33 = vpop.eup %4384 }
 0x388   : > { %v2030_v37 = vsel %vm946_vm1, %v5428_v33, 0.0 }
 0x38a   : > { %4253 = vrot.lane.b32.xlu1 %v4924_v10, %s4640_s8 }
 0x38e   : > { %4258 = vrot.lane.b32.xlu1 %v4920_v9, %s4640_s8  ;;  %s4642_s8 = smov [#allocation10]  }
 0x392   : > { %4263 = vrot.lane.b32.xlu1 %v4924_v10, %s4641_s20 }
 0x394   : > { %4243 = vrot.lane.b32.xlu0 %v4924_v10, %s4639_s10  ;;  %s3373_s10 = scalar_lea.sflag [#allocation4], %s4821_s17 }
 0x3b6   : > { %2031 = vadd.xlane.f32.xlu1 %v2030_v37  ;;  %v4226_v37 = vunpack.i.h.bf16 %v5111_v32 }
 0x3c1   : > { %v1951_v47 = vpop.xlane.xlu1 %1950 }
 0x3c2   : > { %4386 = vrcp.f32 %v1951_v47  ;;  %v4225_v47 = vunpack.i.l.bf16 %v5111_v32  ;;  %v4230_v32 = vunpack.i.l.bf16 %v5123_v45 }
 0x3c5   : > { %v1954_v4 = vpop.xlane.xlu0 %1953 }
 0x3c6   : > { %4388 = vrcp.f32 %v1954_v4 }
 0x3c7   : > { %4268 = vrot.lane.b32.xlu1 %v4920_v9, %s4641_s20  ;;  %s4552_s20 = sshll.u32 %s4642_s8, 4  ;;  %s4553_s20 = int_to_ptr.vmem [resolvable:$false] %s4552_s20 }
 0x3c8   : > { %s4554_s15 = scalar_lea.vmem %s4553_s20, 1024  ;;  %p4555_p2 = scmp.lt.s32.totalorder %s5547_s29, %s4553_s20 }
 0x3c9   : > { %p4556_p3 = scmp.lt.s32.totalorder %s4554_s15, %s4548_s25 }
 0x3ca   : > { %v1957_v10 = vpop.xlane.xlu1 %1956 }
 0x3cb   : > { %4390 = vrcp.f32 %v1957_v10  ;;  %p4557_p9 = por %p4556_p3, %p4555_p2 }
 0x3cd   : > { %p4558_p7 = pnand %p4557_p9, %p4551_p1 }
 0x3ce   : > { %v1960_v57 = vpop.xlane.xlu0 %1959 }
 0x3cf   : > { %v1963_v19 = vpop.xlane.xlu1 %1962  ;;  %4392 = vrcp.f32 %v1960_v57  ;;  %v4387_v51 = vpop.eup %4386 }
 0x3d0   : > { %4394 = vrcp.f32 %v1963_v19  ;;  %v2069_v58 = vmul.f32 %v4387_v51, %v5271_v41  ;;  %v934_v19 = vpack.c.bf16 %v4226_v37, %v4225_v47  ;;  %v4231_v51 = vunpack.i.h.bf16 %v5123_v45 }
 0x3d1   : > { %v4235_v45 = vunpack.i.l.bf16 %v5434_v0 }
 0x3d3   : > { %v4389_v15 = vpop.eup %4388  ;;  %v1969_v54 = vpop.xlane.xlu1 %1968 }
 0x3d4   : > { %v1966_v38 = vpop.xlane.xlu0 %1965  ;;  %v2070_v63 = vmul.f32 %v4389_v15, %v5277_v7 }
 0x3d5   : > { %4396 = vrcp.f32 %v1966_v38  ;;  %v935_v38 = vpack.c.bf16 %v4231_v51, %v4230_v32 }
 0x3d6   : > { %v2099_v9 = vpack.c.bf16 %v2070_v63, %v2069_v58  ;;  %4398 = vrcp.f32 %v1969_v54  ;;  %v4236_v58 = vunpack.i.h.bf16 %v5434_v0  ;;  %v4241_v0 = vunpack.i.h.bf16 %v5432_v18 }
 0x3d7   : > { %v1975_v50 = vpop.xlane.xlu1 %1974 }
 0x3d8   : > { %v1972_v13 = vpop.xlane.xlu0 %1971  ;;  %3838 = vmatmul.mubr.msk.bf16.vlgmr.msra.gmra.mxu1 %vm946_vm1, %v2099_v9  ;;  %v4391_v1 = vpop.eup %4390 }
 0x3d9   : > { %4400 = vrcp.f32 %v1972_v13  ;;  %3848 = vmatpush3.bf16.msra.mxu1 %v932_v53  ;;  %3849 = vmatprep.mubr.msk.bf16.mxu1 %vm4634_vm0, %v4633_v27  ;;  %v2071_v20 = vmul.f32 %v4391_v1, %v5285_v12  ;;  %v4240_v13 = vunpack.i.l.bf16 %v5432_v18  ;;  %v936_v1 = vpack.c.bf16 %v4236_v58, %v4235_v45 }
 0x3da   : > { %3859 = vmatprep.subr.bf16.mxu1 %v4633_v27  ;;  %4402 = vrcp.f32 %v1975_v50 }
 0x3db   : > { %v1981_v41 = vpop.xlane.xlu1 %1980  ;;  %v937_v39 = vpack.c.bf16 %v4241_v0, %v4240_v13 }
 0x3dc   : > { %v1978_v14 = vpop.xlane.xlu0 %1977  ;;  %v4393_v7 = vpop.eup %4392 }
 0x3dd   : > { %4404 = vrcp.f32 %v1978_v14  ;;  %v2072_v26 = vmul.f32 %v4393_v7, %v5291_v25  ;;  %v4395_v42 = vpop.eup %4394 }
 0x3de   : > { %4406 = vrcp.f32 %v1981_v41  ;;  %v2073_v12 = vmul.f32 %v4395_v42, %v5293_v56 }
 0x3df   : > { %v1987_v16 = vpop.xlane.xlu1 %1986  ;;  %v2100_v3 = vpack.c.bf16 %v2072_v26, %v2071_v20 }
 0x3e0   : > { %v1984_v17 = vpop.xlane.xlu0 %1983 }
 0x3e1   : > { %4408 = vrcp.f32 %v1984_v17  ;;  %3844 = vmatmul.mubr.msk.bf16.vlgmr.msra.gmra.mxu0 %vm946_vm1, %v2100_v3 }
 0x3e2   : > { %v4397_v49 = vpop.eup %4396  ;;  %4410 = vrcp.f32 %v1987_v16  ;;  %3854 = vmatpush3.bf16.msra.mxu0 %v933_v31  ;;  %3855 = vmatprep.mubr.msk.bf16.mxu0 %vm4634_vm0, %v4633_v27 }
 0x3e3   : > { %v2074_v25 = vmul.f32 %v4397_v49, %v5303_v46  ;;  %3865 = vmatprep.subr.bf16.mxu0 %v4633_v27  ;;  %v4399_v4 = vpop.eup %4398 }
 0x3e4   : > { %v1990_v6 = vpop.xlane.xlu0 %1989  ;;  %v2075_v36 = vmul.f32 %v4399_v4, %v5301_v55 }
 0x3e5   : > { %4412 = vrcp.f32 %v1990_v6  ;;  %v2101_v10 = vpack.c.bf16 %v2074_v25, %v2073_v12 }
 0x3e6   : > { %v4401_v57 = vpop.eup %4400  ;;  %v1999_v20 = vpop.xlane.xlu1 %1998 }
 0x3e7   : > { %3850 = vmatmul.mubr.msk.bf16.vlgmr.msra.gmra.mxu1 %vm946_vm1, %v2101_v10  ;;  %v2076_v56 = vmul.f32 %v4401_v57, %v5311_v8  ;;  %v4403_v30 = vpop.eup %4402 }
 0x3e8   : > { %v1993_v15 = vpop.xlane.xlu0 %1992  ;;  %3860 = vmatpush3.bf16.msra.mxu1 %v934_v19  ;;  %3861 = vmatprep.mubr.msk.bf16.mxu1 %vm4634_vm0, %v4633_v27  ;;  %v2077_v8 = vmul.f32 %v4403_v30, %v5313_v21 }
 0x3e9   : > { %v2102_v46 = vpack.c.bf16 %v2076_v56, %v2075_v36  ;;  %3871 = vmatprep.subr.bf16.mxu1 %v4633_v27  ;;  %4414 = vrcp.f32 %v1993_v15 }
 0x3ea   : > { %v4405_v54 = vpop.eup %4404 }
 0x3eb   : > { %3856 = vmatmul.mubr.msk.bf16.vlgmr.msra.gmra.mxu0 %vm946_vm1, %v2102_v46  ;;  %v2078_v63 = vmul.f32 %v4405_v54, %v5322_v43  ;;  %v4407_v9 = vpop.eup %4406 }
 0x3ec   : > { %v1996_v55 = vpop.xlane.xlu0 %1995  ;;  %3866 = vmatpush3.bf16.msra.mxu0 %v935_v38  ;;  %3867 = vmatprep.mubr.msk.bf16.mxu0 %vm4634_vm0, %v4633_v27  ;;  %v2079_v43 = vmul.f32 %v4407_v9, %v5320_v35 }
 0x3ed   : > { %4416 = vrcp.f32 %v1996_v55  ;;  %v2103_v53 = vpack.c.bf16 %v2078_v63, %v2077_v8  ;;  %3877 = vmatprep.subr.bf16.mxu0 %v4633_v27 }
 0x3ee   : > { %v4409_v50 = vpop.eup %4408 }
 0x3ef   : > { %v4411_v41 = vpop.eup %4410  ;;  %3862 = vmatmul.mubr.msk.bf16.vlgmr.msra.gmra.mxu1 %vm946_vm1, %v2103_v53  ;;  %v2080_v14 = vmul.f32 %v4409_v50, %v5329_v60 }
 0x3f0   : > { %v2002_v21 = vpop.xlane.xlu0 %2001  ;;  %3872 = vmatpush3.bf16.msra.mxu1 %v936_v1  ;;  %3873 = vmatprep.mubr.msk.bf16.mxu1 %vm4634_vm0, %v4633_v27  ;;  %v2081_v18 = vmul.f32 %v4411_v41, %v5331_v59 }
 0x3f1   : > { %v2104_v40 = vpack.c.bf16 %v2080_v14, %v2079_v43  ;;  %3883 = vmatprep.subr.bf16.mxu1 %v4633_v27 }
 0x3f2   : > { %v4413_v7 = vpop.eup %4412  ;;  %v2014_v60 = vpop.xlane.xlu1 %2013 }
 0x3f3   : > { %v2082_v26 = vmul.f32 %v4413_v7, %v5339_v62  ;;  %3868 = vmatmul.mubr.msk.bf16.vlgmr.msra.gmra.mxu0 %vm946_vm1, %v2104_v40 }
 0x3f4   : > { %v2005_v16 = vpop.xlane.xlu0 %2004  ;;  %3878 = vmatpush3.bf16.msra.mxu0 %v937_v39  ;;  %3879 = vmatprep.mubr.msk.bf16.mxu0 %vm4634_vm0, %v4633_v27 }
 0x3f5   : > { %v2105_v35 = vpack.c.bf16 %v2082_v26, %v2081_v18  ;;  %3889 = vmatprep.subr.bf16.mxu0 %v4633_v27  ;;  %4418 = vrcp.f32 %v2005_v16 }
 0x3f6   : > { %v4415_v17 = vpop.eup %4414 }
 0x3f7   : > { %3874 = vmatmul.mubr.msk.bf16.vlgmr.msra.gmra.mxu1 %vm946_vm1, %v2105_v35  ;;  %v2083_v42 = vmul.f32 %v4415_v17, %v5344_v52  ;;  %v4308_v17 = vld [vmem:[#allocation7 + $0x10] sm:$0xff]  }
 0x3f8   : > { %v2011_v3 = vpop.xlane.xlu0 %2010  ;;  %3885 = vmatprep.mubr.msk.bf16.mxu1 %vm4634_vm0, %v4633_v27 }
 0x3fa   : > { %v4417_v59 = vpop.eup %4416  ;;  %v2020_v62 = vpop.xlane.xlu1 %2019 }
 0x3fb   : > { %v2084_v31 = vmul.f32 %v4417_v59, %v5353_v2 }
 0x3fc   : > { %v2008_v49 = vpop.xlane.xlu0 %2007 }
 0x3fd   : > { %4420 = vrcp.f32 %v2008_v49  ;;  %v2106_v37 = vpack.c.bf16 %v2084_v31, %v2083_v42 }
 0x3fe   : > { %4422 = vrcp.f32 %v2002_v21  ;;  %v2026_v47 = vpop.xlane.xlu1 %2025 }
 0x3ff   : > { %3880 = vmatmul.mubr.msk.bf16.vlgmr.msra.gmra.mxu0 %vm946_vm1, %v2106_v37  ;;  %4424 = vrcp.f32 %v1999_v20 }
 0x400   : > { %v2017_v6 = vpop.xlane.xlu0 %2016  ;;  %3891 = vmatprep.mubr.msk.bf16.mxu0 %vm4634_vm0, %v4633_v27 }
 0x401   : > { %4426 = vrcp.f32 %v2017_v6  ;;  %v4306_v6 = vld [vmem:[#allocation7] sm:$0xff]  }
 0x402   : > { %4428 = vrcp.f32 %v2020_v62  ;;  %v4249_v12 = vpop.permute.xlu1 %4248  ;;  %v4419_v57 = vpop.eup %4418 }
 0x403   : > { %v4251_v25 = vunpack.i.h.bf16 %v4249_v12  ;;  %v4250_v4 = vunpack.i.l.bf16 %v4249_v12  ;;  %4430 = vrcp.f32 %v2011_v3  ;;  %v2087_v36 = vmul.f32 %v4419_v57, %v5362_v22  ;;  %v4309_v57 = vld [vmem:[#allocation7 + $0x18] sm:$0xff]  }
 0x404   : > { %v2023_v52 = vpop.xlane.xlu0 %2022  ;;  %4432 = vrcp.f32 %v2014_v60 }
 0x405   : > { %v939_v2 = vpack.c.bf16 %v4251_v25, %v4250_v4  ;;  %4434 = vrcp.f32 %v2023_v52 }
 0x406   : > { %v4254_v10 = vpop.permute.xlu1 %4253  ;;  %4436 = vrcp.f32 %v2026_v47 }
 0x407   : > { %3890 = vmatpush3.bf16.msra.mxu0 %v939_v2  ;;  %v4256_v53 = vunpack.i.h.bf16 %v4254_v10  ;;  %v4255_v50 = vunpack.i.l.bf16 %v4254_v10 }
 0x408   : > { %v5496_v19 = vpop.xlane.xlu0 %2028  ;;  %3901 = vmatprep.subr.bf16.mxu0 %v4633_v27 }
 0x409   : > { %v940_v41 = vpack.c.bf16 %v4256_v53, %v4255_v50  ;;  %4438 = vrcp.f32 %v5496_v19 }
 0x40a   : > { %v4421_v51 = vpop.eup %4420  ;;  %v4259_v15 = vpop.permute.xlu1 %4258 }
 0x40b   : > { %v4423_v32 = vpop.eup %4422  ;;  %v2088_v56 = vmul.f32 %v4421_v51, %v5382_v29  ;;  %v4261_v30 = vunpack.i.h.bf16 %v4259_v15  ;;  %v4260_v46 = vunpack.i.l.bf16 %v4259_v15 }
 0x40c   : > { %v4244_v54 = vpop.permute.xlu0 %4243  ;;  %v4425_v38 = vpop.eup %4424  ;;  %v2086_v9 = vmul.f32 %v4423_v32, %v5359_v28  ;;  %v4311_v32 = vld [vmem:[#allocation7 + $0x28] sm:$0xff]  }
 0x40d   : > { %v4246_v58 = vunpack.i.h.bf16 %v4244_v54  ;;  %v4245_v45 = vunpack.i.l.bf16 %v4244_v54  ;;  %v2108_v55 = vpack.c.bf16 %v2088_v56, %v2087_v36  ;;  %v941_v63 = vpack.c.bf16 %v4261_v30, %v4260_v46 }
 0x40e   : > { %v4427_v8 = vpop.eup %4426  ;;  %v2085_v29 = vmul.f32 %v4425_v38, %v5346_v48  ;;  %v4264_v43 = vpop.permute.xlu1 %4263 }
 0x40f   : > { %v938_v0 = vpack.c.bf16 %v4246_v58, %v4245_v45  ;;  %3892 = vmatmul.mubr.msk.bf16.vlgmr.msra.gmra.mxu0 %vm946_vm1, %v2108_v55  ;;  %v4429_v22 = vpop.eup %4428  ;;  %v2091_v13 = vmul.f32 %v4427_v8, %v5391_v61  ;;  %v4266_v7 = vunpack.i.h.bf16 %v4264_v43  ;;  %v4265_v40 = vunpack.i.l.bf16 %v4264_v43  ;;  %v4310_v58 = vld [vmem:[#allocation7 + $0x20] sm:$0xff]  }
 0x410   : > { %3902 = vmatpush3.bf16.msra.mxu0 %v941_v63  ;;  %3903 = vmatprep.mubr.msk.bf16.mxu0 %vm4634_vm0, %v4633_v27  ;;  %v2107_v1 = vpack.c.bf16 %v2086_v9, %v2085_v29  ;;  %v4431_v28 = vpop.eup %4430  ;;  %v2092_v21 = vmul.f32 %v4429_v22, %v5384_v44 }
 0x411   : > { %3884 = vmatpush3.bf16.msra.mxu1 %v938_v0  ;;  %3913 = vmatprep.subr.bf16.mxu0 %v4633_v27  ;;  %v4433_v14 = vpop.eup %4432  ;;  %v2089_v61 = vmul.f32 %v4431_v28, %v5377_v5  ;;  %v942_v18 = vpack.c.bf16 %v4266_v7, %v4265_v40 }
 0x412   : > { %3895 = vmatprep.subr.bf16.mxu1 %v4633_v27  ;;  %v2110_v48 = vpack.c.bf16 %v2092_v21, %v2091_v13  ;;  %v2090_v39 = vmul.f32 %v4433_v14, %v5367_v34  ;;  %v4435_v20 = vpop.eup %4434  ;;  %v4307_v34 = vld [vmem:[#allocation7 + $0x8] sm:$0xff]  }
 0x413   : > { %v4437_v26 = vpop.eup %4436  ;;  %v2093_v5 = vmul.f32 %v4435_v20, %v5405_v23 }
 0x414   : > { %3886 = vmatmul.mubr.msk.bf16.vlgmr.msra.gmra.mxu1 %vm946_vm1, %v2107_v1  ;;  %v2109_v44 = vpack.c.bf16 %v2090_v39, %v2089_v61  ;;  %v2094_v16 = vmul.f32 %v4437_v26, %v5395_v11  ;;  %v4312_v1 = vld [vmem:[#allocation7 + $0x30] sm:$0xff]  }
 0x415   : > { %3896 = vmatpush3.bf16.msra.mxu1 %v940_v41  ;;  %3897 = vmatprep.mubr.msk.bf16.mxu1 %vm4634_vm0, %v4633_v27 }
 0x416   : > { %3907 = vmatprep.subr.bf16.mxu1 %v4633_v27  ;;  %v2111_v35 = vpack.c.bf16 %v2094_v16, %v2093_v5  ;;  %v4439_v25 = vpop.eup %4438 }
 0x417   : > { %3904 = vmatmul.mubr.msk.bf16.vlgmr.msra.gmra.mxu0 %vm946_vm1, %v2110_v48  ;;  %v2095_v52 = vmul.f32 %v4439_v25, %v5410_v24 }
 0x418   : > { %3915 = vmatprep.mubr.msk.bf16.mxu0 %vm4634_vm0, %v4633_v27 }
 0x41c   : > { %3898 = vmatmul.mubr.msk.bf16.vlgmr.msra.gmra.mxu1 %vm946_vm1, %v2109_v44  ;;  %v4313_v44 = vld [vmem:[#allocation7 + $0x38] sm:$0xff]  }
 0x41d   : > { %3908 = vmatpush3.bf16.msra.mxu1 %v942_v18  ;;  %3909 = vmatprep.mubr.msk.bf16.mxu1 %vm4634_vm0, %v4633_v27 }
 0x41e   : > { %3919 = vmatprep.subr.bf16.mxu1 %v4307_v34 }
 0x424   : > { %3910 = vmatmul.mubr.msk.bf16.vlgmr.msra.gmra.mxu1 %vm946_vm1, %v2111_v35 }
 0x425   : > { %3920 = vmatpush3.bf16.msra.mxu1 %v4307_v34 }
 0x426   : > { %3931 = vmatprep.subr.bf16.mxu1 %v4308_v17 }
 0x42d   : > { %v2150_v60 = vpop.f32.mrf.mxu1 }
 0x42f   : > { %v3827_v3 = vpop.f32.mrf.mxu1 }
 0x431   : > { %v2153_v59 = vpop.f32.mrf.mxu1 }
 0x432   : > { %v2817_v51 = vpack.c.bf16 %v2153_v59, %v2150_v60 }
 0x433   : > { %v3828_v62 = vpop.f32.mrf.mxu1 }
 0x439   : > { %v2194_v42 = vpop.f32.mrf.mxu0 }
 0x43b   : > { %v3833_v31 = vpop.f32.mrf.mxu0 }
 0x43d   : > { %v2197_v49 = vpop.f32.mrf.mxu0 }
 0x43e   : > { %v2818_v19 = vpack.c.bf16 %v2197_v49, %v2194_v42 }
 0x43f   : > { %v3834_v27 = vpop.f32.mrf.mxu0  ;;  %v2032_v23 = vpop.xlane.xlu1 %2031 }
 0x440   : > { %4440 = vrcp.f32 %v2032_v23 }
 0x443   : > { %v4269_v11 = vpop.permute.xlu1 %4268 }
 0x444   : > { %v4271_v37 = vunpack.i.h.bf16 %v4269_v11  ;;  %v4270_v47 = vunpack.i.l.bf16 %v4269_v11 }
 0x446   : > { %v943_v12 = vpack.c.bf16 %v4271_v37, %v4270_v47 }
 0x448   : > { %3914 = vmatpush3.bf16.msra.mxu0 %v943_v12 }
 0x449   : > { %3925 = vmatprep.subr.bf16.mxu0 %v4306_v6 }
 0x44d   : > { %v4441_v4 = vpop.eup %4440 }
 0x44e   : > { %v2096_v2 = vmul.f32 %v4441_v4, %v5428_v33 }
 0x450   : > { %v2112_v10 = vpack.c.bf16 %v2096_v2, %v2095_v52 }
 0x452   : > { %3916 = vmatmul.mubr.msk.bf16.vlgmr.msra.gmra.mxu0 %vm946_vm1, %v2112_v10 }
 0x453   : > { %3927 = vmatprep.mubr.msk.bf16.mxu0 %vm946_vm1, %v2817_v51  ;;  %3926 = vmatpush3.bf16.msra.mxu0 %v4306_v6 }
 0x454   : > { %3937 = vmatprep.subr.bf16.mxu0 %v4309_v57 }
 0x45a   : > { %3928 = vmatmul.mubr.msk.bf16.vlgmr.msra.gmra.mxu0 %vm946_vm1, %v2818_v19 }
 0x45b   : > { %3938 = vmatpush3.bf16.msra.mxu0 %v4309_v57 }
 0x45c   : > { %3949 = vmatprep.subr.bf16.mxu0 %v4311_v32 }
 0x498   : > { %v2238_v15 = vpop.f32.mrf.mxu1 }
 0x49a   : > { %v3839_v36 = vpop.f32.mrf.mxu1 }
 0x49c   : > { %v2241_v24 = vpop.f32.mrf.mxu1 }
 0x49d   : > { %v2819_v56 = vpack.c.bf16 %v2241_v24, %v2238_v15 }
 0x49e   : > { %v3840_v33 = vpop.f32.mrf.mxu1 }
 0x49f   : > { %3921 = vmatprep.mubr.msk.bf16.mxu1 %vm946_vm1, %v2819_v56 }
 0x4a1   : > { %v2282_v30 = vpop.f32.mrf.mxu0 }
 0x4a3   : > { %v3845_v46 = vpop.f32.mrf.mxu0 }
 0x4a5   : > { %v2285_v54 = vpop.f32.mrf.mxu0 }
 0x4a6   : > { %v2820_v38 = vpack.c.bf16 %v2285_v54, %v2282_v30 }
 0x4a7   : > { %v2326_v45 = vpop.f32.mrf.mxu1  ;;  %v3846_v55 = vpop.f32.mrf.mxu0 }
 0x4a8   : > { %3922 = vmatmul.mubr.msk.bf16.vlgmr.msra.gmra.mxu1 %vm946_vm1, %v2820_v38 }
 0x4a9   : > { %v3851_v8 = vpop.f32.mrf.mxu1  ;;  %3932 = vmatpush3.bf16.msra.mxu1 %v4308_v17 }
 0x4aa   : > { %3943 = vmatprep.subr.bf16.mxu1 %v4310_v58 }
 0x4ab   : > { %v2329_v63 = vpop.f32.mrf.mxu1  ;;  %v2370_v9 = vpop.f32.mrf.mxu0 }
 0x4ac   : > { %v2821_v53 = vpack.c.bf16 %v2329_v63, %v2326_v45 }
 0x4ad   : > { %v3852_v50 = vpop.f32.mrf.mxu1  ;;  %v3857_v0 = vpop.f32.mrf.mxu0 }
 0x4ae   : > { %3933 = vmatprep.mubr.msk.bf16.mxu1 %vm946_vm1, %v2821_v53 }
 0x4af   : > { %v2373_v22 = vpop.f32.mrf.mxu0  ;;  %v2414_v29 = vpop.f32.mrf.mxu1 }
 0x4b0   : > { %v2822_v13 = vpack.c.bf16 %v2373_v22, %v2370_v9 }
 0x4b1   : > { %v3858_v28 = vpop.f32.mrf.mxu0  ;;  %v3863_v41 = vpop.f32.mrf.mxu1 }
 0x4b2   : > { %3934 = vmatmul.mubr.msk.bf16.vlgmr.msra.gmra.mxu1 %vm946_vm1, %v2822_v13 }
 0x4b3   : > { %v2417_v21 = vpop.f32.mrf.mxu1  ;;  %v2458_v43 = vpop.f32.mrf.mxu0  ;;  %3944 = vmatpush3.bf16.msra.mxu1 %v4310_v58 }
 0x4b4   : > { %v2823_v14 = vpack.c.bf16 %v2417_v21, %v2414_v29  ;;  %3955 = vmatprep.subr.bf16.mxu1 %v4312_v1 }
 0x4b5   : > { %v3864_v48 = vpop.f32.mrf.mxu1  ;;  %v3869_v61 = vpop.f32.mrf.mxu0 }
 0x4b6   : > { %3939 = vmatprep.mubr.msk.bf16.mxu0 %vm946_vm1, %v2823_v14 }
 0x4b7   : > { %v2461_v7 = vpop.f32.mrf.mxu0  ;;  %v2502_v40 = vpop.f32.mrf.mxu1 }
 0x4b8   : > { %v2824_v39 = vpack.c.bf16 %v2461_v7, %v2458_v43 }
 0x4b9   : > { %v3870_v20 = vpop.f32.mrf.mxu0  ;;  %v3875_v18 = vpop.f32.mrf.mxu1 }
 0x4ba   : > { %3940 = vmatmul.mubr.msk.bf16.vlgmr.msra.gmra.mxu0 %vm946_vm1, %v2824_v39 }
 0x4bb   : > { %v2505_v26 = vpop.f32.mrf.mxu1  ;;  %3950 = vmatpush3.bf16.msra.mxu0 %v4311_v32 }
 0x4bc   : > { %v2825_v5 = vpack.c.bf16 %v2505_v26, %v2502_v40  ;;  %3961 = vmatprep.subr.bf16.mxu0 %v4313_v44 }
 0x4bd   : > { %v3876_v16 = vpop.f32.mrf.mxu1 }
 0x4be   : > { %3945 = vmatprep.mubr.msk.bf16.mxu1 %vm946_vm1, %v2825_v5 }
 0x4bf   : > { %v2546_v35 = vpop.f32.mrf.mxu0 }
 0x4c1   : > { %v3881_v34 = vpop.f32.mrf.mxu0 }
 0x4c3   : > { %v2549_v60 = vpop.f32.mrf.mxu0 }
 0x4c4   : > { %v2826_v17 = vpack.c.bf16 %v2549_v60, %v2546_v35 }
 0x4c5   : > { %v3882_v3 = vpop.f32.mrf.mxu0 }
 0x4c6   : > { %3946 = vmatmul.mubr.msk.bf16.vlgmr.msra.gmra.mxu1 %vm946_vm1, %v2826_v17 }
 0x4c7   : > { %3956 = vmatpush3.bf16.msra.mxu1 %v4312_v1 }
 0x4cf   : > { %v2634_v59 = vpop.f32.mrf.mxu0 }
 0x4d1   : > { %v3893_v62 = vpop.f32.mrf.mxu0 }
 0x4d3   : > { %v2637_v42 = vpop.f32.mrf.mxu0 }
 0x4d4   : > { %v2590_v31 = vpop.f32.mrf.mxu1  ;;  %v2828_v6 = vpack.c.bf16 %v2637_v42, %v2634_v59 }
 0x4d5   : > { %v3894_v49 = vpop.f32.mrf.mxu0 }
 0x4d6   : > { %v3887_v27 = vpop.f32.mrf.mxu1 }
 0x4d7   : > { %v2722_v23 = vpop.f32.mrf.mxu0 }
 0x4d8   : > { %v2593_v11 = vpop.f32.mrf.mxu1 }
 0x4d9   : > { %v2827_v37 = vpack.c.bf16 %v2593_v11, %v2590_v31  ;;  %v3905_v47 = vpop.f32.mrf.mxu0 }
 0x4da   : > { %v3888_v12 = vpop.f32.mrf.mxu1 }
 0x4db   : > { %v2725_v25 = vpop.f32.mrf.mxu0  ;;  %3951 = vmatprep.mubr.msk.bf16.mxu0 %vm946_vm1, %v2827_v37 }
 0x4dc   : > { %v2678_v4 = vpop.f32.mrf.mxu1  ;;  %3952 = vmatmul.mubr.msk.bf16.vlgmr.msra.gmra.mxu0 %vm946_vm1, %v2828_v6  ;;  %v2830_v51 = vpack.c.bf16 %v2725_v25, %v2722_v23 }
 0x4dd   : > { %v3906_v52 = vpop.f32.mrf.mxu0  ;;  %3962 = vmatpush3.bf16.msra.mxu0 %v4313_v44 }
 0x4de   : > { %v3899_v2 = vpop.f32.mrf.mxu1 }
 0x4e0   : > { %v2681_v10 = vpop.f32.mrf.mxu1 }
 0x4e1   : > { %v2829_v57 = vpack.c.bf16 %v2681_v10, %v2678_v4 }
 0x4e2   : > { %v3900_v19 = vpop.f32.mrf.mxu1 }
 0x4e3   : > { %3957 = vmatprep.mubr.msk.bf16.mxu1 %vm946_vm1, %v2829_v57 }
 0x4e4   : > { %v2766_v32 = vpop.f32.mrf.mxu1  ;;  %3958 = vmatmul.mubr.msk.bf16.vlgmr.msra.gmra.mxu1 %vm946_vm1, %v2830_v51 }
 0x4e6   : > { %v3911_v15 = vpop.f32.mrf.mxu1 }
 0x4e8   : > { %v2769_v36 = vpop.f32.mrf.mxu1 }
 0x4e9   : > { %v2831_v24 = vpack.c.bf16 %v2769_v36, %v2766_v32 }
 0x4ea   : > { %v3912_v56 = vpop.f32.mrf.mxu1 }
 0x4eb   : > { %3963 = vmatprep.mubr.msk.bf16.mxu0 %vm946_vm1, %v2831_v24 }
 0x512   : > { %v2810_v33 = vpop.f32.mrf.mxu0 }
 0x514   : > { %v3917_v30 = vpop.f32.mrf.mxu0 }
 0x516   : > { %v2813_v46 = vpop.f32.mrf.mxu0 }
 0x517   : > { %v2832_v54 = vpack.c.bf16 %v2813_v46, %v2810_v33 }
 0x518   : > { %v3918_v38 = vpop.f32.mrf.mxu0 }
 0x519   : > { %3964 = vmatmul.mubr.msk.bf16.vlgmr.msra.gmra.mxu0 %vm946_vm1, %v2832_v54 }
 0x51a   : > { %v3929_v8 = vpop.f32.mrf.mxu0 }
 0x51c   : > { %v2945_v9 = vpop.f32.mrf.mxu0 }
 0x51e   : > { %v3930_v50 = vpop.f32.mrf.mxu0 }
 0x520   : > { %v2948_v22 = vpop.f32.mrf.mxu0 }
 0x568   : > { %v3923_v58 = vpop.f32.mrf.mxu1 }
 0x569   : > { %v2954_v40 = vadd.f32 %v3929_v8, %v3923_v58 }
 0x56a   : > { %v2884_v45 = vpop.f32.mrf.mxu1 }
 0x56b   : > { %v2946_v20 = vadd.f32 %v2945_v9, %v2884_v45 }
 0x56c   : > { %v3924_v55 = vpop.f32.mrf.mxu1 }
 0x56d   : > { %v2957_v26 = vadd.f32 %v3930_v50, %v3924_v55 }
 0x56e   : > { %v2887_v63 = vpop.f32.mrf.mxu1 }
 0x56f   : > { %v2949_v60 = vadd.f32 %v2948_v22, %v2887_v63 }
 0x572   : > { %v3935_v53 = vpop.f32.mrf.mxu1 }
 0x573   : > { %v3026_v18 = vadd.f32 %v3935_v53, %v2954_v40 }
 0x574   : > { %v3009_v0 = vpop.f32.mrf.mxu1 }
 0x575   : > { %v3024_v5 = vadd.f32 %v3009_v0, %v2946_v20 }
 0x576   : > { %v3936_v29 = vpop.f32.mrf.mxu1 }
 0x577   : > { %v3027_v17 = vadd.f32 %v3936_v29, %v2957_v26 }
 0x578   : > { %v3012_v1 = vpop.f32.mrf.mxu1 }
 0x579   : > { %v3025_v62 = vadd.f32 %v3012_v1, %v2949_v60 }
 0x57a   : > { %v3941_v13 = vpop.f32.mrf.mxu0 }
 0x57b   : > { %v3094_v16 = vadd.f32 %v3941_v13, %v3026_v18 }
 0x57c   : > { %v3077_v28 = vpop.f32.mrf.mxu0 }
 0x57d   : > { %v3092_v3 = vadd.f32 %v3077_v28, %v3024_v5 }
 0x57e   : > { %v3942_v21 = vpop.f32.mrf.mxu0 }
 0x57f   : > { %v3095_v42 = vadd.f32 %v3942_v21, %v3027_v17 }
 0x580   : > { %v3080_v14 = vpop.f32.mrf.mxu0 }
 0x581   : > { %v3093_v11 = vadd.f32 %v3080_v14, %v3025_v62 }
 0x586   : > { %v3947_v41 = vpop.f32.mrf.mxu1 }
 0x587   : > { %v3162_v59 = vadd.f32 %v3947_v41, %v3094_v16 }
 0x588   : > { %v3145_v43 = vpop.f32.mrf.mxu1 }
 0x589   : > { %v3160_v31 = vadd.f32 %v3145_v43, %v3092_v3 }
 0x58a   : > { %v3948_v48 = vpop.f32.mrf.mxu1 }
 0x58b   : > { %v3163_v37 = vadd.f32 %v3948_v48, %v3095_v42 }
 0x58c   : > { %v3148_v7 = vpop.f32.mrf.mxu1 }
 0x58d   : > { %v3161_v25 = vadd.f32 %v3148_v7, %v3093_v11 }
 0x59c   : > { %v3953_v61 = vpop.f32.mrf.mxu0 }
 0x59d   : > { %v3230_v49 = vadd.f32 %v3953_v61, %v3162_v59 }
 0x59e   : > { %v3213_v39 = vpop.f32.mrf.mxu0 }
 0x59f   : > { %v3228_v47 = vadd.f32 %v3213_v39, %v3160_v31 }
 0x5a0   : > { %v3954_v35 = vpop.f32.mrf.mxu0 }
 0x5a1   : > { %v3231_v4 = vadd.f32 %v3954_v35, %v3163_v37 }
 0x5a2   : > { %v3216_v27 = vpop.f32.mrf.mxu0 }
 0x5a3   : > { %v3229_v51 = vadd.f32 %v3216_v27, %v3161_v25 }
 0x5a4   : > { %v3959_v44 = vpop.f32.mrf.mxu1 }
 0x5a5   : > { %v3298_v6 = vadd.f32 %v3959_v44, %v3230_v49 }
 0x5a6   : > { %v3281_v34 = vpop.f32.mrf.mxu1 }
 0x5a7   : > { %v3296_v52 = vadd.f32 %v3281_v34, %v3228_v47 }
 0x5a8   : > { %v3960_v23 = vpop.f32.mrf.mxu1 }
 0x5a9   : > { %v3299_v19 = vadd.f32 %v3960_v23, %v3231_v4 }
 0x5aa   : > { %v3284_v10 = vpop.f32.mrf.mxu1 }
 0x5ab   : > { %v3297_v36 = vadd.f32 %v3284_v10, %v3229_v51 }
 0x5d9   : > { %v3965_v12 = vpop.f32.mrf.mxu0 }
 0x5da   : > { %v3366_v2 = vadd.f32 %v3965_v12, %v3298_v6 }
 0x5db   : > { %v3349_v57 = vpop.f32.mrf.mxu0 }
 0x5dc   : > { %3370 = vst [vmem:[%s328_s27 + $0x10] sm:$0xff] %v3366_v2  ;;  %v3364_v32 = vadd.f32 %v3349_v57, %v3296_v52 }
 0x5dd   : > { %v3966_v15 = vpop.f32.mrf.mxu0 }
 0x5de   : > { %3368 = vst [vmem:[%s328_s27] sm:$0xff] %v3364_v32  ;;  %v3367_v24 = vadd.f32 %v3966_v15, %v3299_v19 }
 0x5df   : > { %v3352_v56 = vpop.f32.mrf.mxu0 }
 0x5e0   : > { %3371 = vst [vmem:[%s328_s27 + $0x18] sm:$0xff] %v3367_v24  ;;  %v3365_v33 = vadd.f32 %v3352_v56, %v3297_v36 }
 0x5e2   : > { %3369 = vst [vmem:[%s328_s27 + $0x8] sm:$0xff] %v3365_v33 }
 0x5e3   : > { %4561 = shalt.err (!%p4558_p7)
}
 0x5e4   : > { %s4562_s30 = scalar_lea.hbm %s5552_s14, 512  ;;  %s4566_s7 = scalar_lea.hbm %s5601_s6, 1024 }
 0x5e5   : > { %p4563_p4 = scmp.ne.s32.totalorder %s5552_s14, %s4562_s30  ;;  %p4567_p11 = scmp.lt.s32.totalorder %s5552_s14, %s5601_s6 }
 0x5e6   : > { %p4568_p13 = scmp.lt.s32.totalorder %s4566_s7, %s4562_s30 }
 0x5e7   : > { %p4564_p8 = pnand %p4563_p4, %p5623_p5 }
 0x5e8   : > { %p4569_p12 = por %p4568_p13, %p4567_p11 }
 0x5e9   : > { %p4565_p6 = pneg %p4564_p8 }
 0x5eb   : > { %p4570_p0 = pnand %p4569_p12, %p4565_p6 }
 0x5ed   : > { %4573 = shalt.err (!%p4570_p0)
}
 0x5ee   : > { %s4643_s11 = smov 128   ;;  %s4644_s12 = smov 8  }
 0x5ef   : > { %3981 = dma.vmem_to_hbm [thread:$0]  (%p5623_p5), %s5547_s29, 512, %s5552_s14, %s3373_s10, %s4643_s11, %s4643_s11, %s4644_s12  }
 0x5f0 PF: > { %s3402_s25 = sand.u32 1, %s4608_s21   ;;  %p5624_p10 = scmp.ne.s32.totalorder %s5609_s28, 0 }
 0x5f1   : > { %p5625_p1 = scmp.ge.s32.totalorder %s4620_s24, 2  ;;  %s3403_s8 = scalar_lea.sflag [#allocation4], %s3402_s25 }
 0x5f3   : > { %p3998_p2 = pnand %p5625_p1, %p5624_p10 }
 0x5f5   : > { %p3999_p3 = pneg %p3998_p2 }
 0x5f7   : > { %4603 = dma.done.wait (%p3999_p3), %s3403_s8, 512  }
 0x5f8   : > { %4605 = vsyncadd (%p3999_p3), %s3403_s8, 4294966784  ;;  %p21_p9 = scmp.ge.s32.totalorder %s4763_s13, 4   ;;  %s5626_s21 = smov %s4612_s22 }
 0x5f9   : > { %s5627_s22 = smov %s4616_s23  ;;  %s5628_s23 = smov %s4773_s16 }
 0x5fa   : > { %s5629_s24 = smov %s4763_s13  ;;  %23 = sbr.rel (!%p21_p9) target bundleno = 7 (0x7), region = 111 }
 0x5ff   :  { %3408 = vsyncpa [#allocation3], 1 }
 0x600   :  { %3410 = vsyncpa [#allocation3 + $0x1], 1 }
 0x601   :  { %3411 = vsyncpa [#allocation6], 1 }
 0x602   :  { %3412 = vsyncpa [#allocation9], 1 }
 0x603   :  { %3413 = vsyncpa [#allocation4], 1 }
 0x604   :  { %3415 = vsyncpa [#allocation4 + $0x1], 1 }

</bundles_post_ra>
